<compile_context>
chip_gen: v6e
topology: v6e:2x2x1
jax: 0.10.0
libtpu: 0.0.40
codegen_flags: <defaults>
</compile_context>

<pallas_src>
import functools

import jax
import jax.numpy as jnp
import numpy as np
from jax.experimental import pallas as pl
from jax.experimental.pallas import tpu as pltpu

NEG_SLOPE = 0.01                 # PyTorch nn.LeakyReLU default
L1, L2, L3, L4 = 4, 8, 16, 8     # layer widths from the module __init__


# ----------------------------------------------------------------------------
# Fully fused Pallas kernel: one invocation per batch element runs the whole
# Discriminator forward with all activations and weights resident in VMEM.
# ----------------------------------------------------------------------------
def _disc_fused_kernel(pos_ref, off_ref, *refs):
    (s1_ref, s3_ref,
     c1p_w, c1p_b, c1o_w, c1o_b,
     l2n2e_kn, l2n2e_ke, l2n2e_b,
     l2e2n_kn, l2e2n_ke, l2e2n_b,
     c3p_w, c3p_b, c3o_w, c3o_b,
     l4n2e_kn, l4n2e_ke, l4n2e_b,
     l4e2n_kn, l4e2n_ke, l4e2n_b,
     lin1_off, lin1_inp, lin1_b, lin2_w, lin2_b,
     out_ref) = refs

    def mm(a, b):
        return jnp.dot(a, b, preferred_element_type=jnp.float32)

    def leaky(y):
        return jnp.where(y >= 0, y, y * NEG_SLOPE)

    def conv(x, s_ref, w_ref, b_ref):
        # Conv1d(k=4, s=2, p=1) over time as 4 selection matmuls (im2col in VMEM).
        # x: (T_in, Cin); s_ref: (4, T_out, T_in); w_ref: (4, Cin, Cout); b_ref: (1, Cout)
        acc = mm(mm(s_ref[0], x), w_ref[0])
        for k in range(1, 4):                       # static unroll
            acc = acc + mm(mm(s_ref[k], x), w_ref[k])
        return leaky(acc + b_ref[...])

    pos = pos_ref[0]   # (T,  J*Cp)
    off = off_ref[0]   # (T,  J)

    # ---- layer1: strided convs + LeakyReLU ----
    inp = conv(pos, s1_ref, c1p_w, c1p_b)          # (T/2, J*L1)
    off = conv(off, s1_ref, c1o_w, c1o_b)          # (T/2, J*L1)

    # ---- layer2: Node2Edge -> Edge2Node (adjacency folded into kron weights) ----
    off = leaky(mm(inp, l2n2e_kn[...]) + mm(off, l2n2e_ke[...]) + l2n2e_b[...])   # (T/2, J*L2)
    inp = leaky(mm(inp, l2e2n_kn[...]) + mm(off, l2e2n_ke[...]) + l2e2n_b[...])   # (T/2, J*L2)

    # ---- layer3: strided convs + LeakyReLU ----
    inp = conv(inp, s3_ref, c3p_w, c3p_b)          # (T/4, J*L3)
    off = conv(off, s3_ref, c3o_w, c3o_b)          # (T/4, J*L3)

    # ---- layer4: Node2Edge -> Edge2Node ----
    off = leaky(mm(inp, l4n2e_kn[...]) + mm(off, l4n2e_ke[...]) + l4n2e_b[...])   # (T/4, J*L4)
    inp = leaky(mm(inp, l4e2n_kn[...]) + mm(off, l4e2n_ke[...]) + l4e2n_b[...])   # (T/4, J*L4)

    # ---- head: concat([off, inp]) folded into a row-split of lin1_w, then lin2 ----
    h = leaky(mm(off, lin1_off[...]) + mm(inp, lin1_inp[...]) + lin1_b[...])      # (T/4, 64)
    y = mm(h, lin2_w[...]) + lin2_b[...]                                          # (T/4, 1)
    out_ref[0] = y.astype(out_ref.dtype)


_FUSED_ORDER = (
    'S1', 'S3',
    'c1p_w', 'c1p_b', 'c1o_w', 'c1o_b',
    'l2n2e_kn', 'l2n2e_ke', 'l2n2e_b',
    'l2e2n_kn', 'l2e2n_ke', 'l2e2n_b',
    'c3p_w', 'c3p_b', 'c3o_w', 'c3o_b',
    'l4n2e_kn', 'l4n2e_ke', 'l4n2e_b',
    'l4e2n_kn', 'l4e2n_ke', 'l4e2n_b',
    'lin1_w_off', 'lin1_w_inp', 'lin1_b', 'lin2_w', 'lin2_b',
)


def discriminator_forward_pallas(fused, x, pos_feat):
    """x: (B, T, J, pos_feat + 1) -> (B, T//4, 1) via one fused pallas_call."""
    B, T, J, _ = x.shape
    assert T % 4 == 0, "two stride-2 convs require T divisible by 4"
    T4 = T // 4

    # Cheap one-time layout glue: split pos/off channels and flatten (J, C) -> J*C
    # (column order j*C + c, matching the PyTorch permute/reshape and the conv weights).
    pos_in = x[..., :pos_feat].reshape(B, T, J * pos_feat)
    off_in = x[..., pos_feat:].reshape(B, T, J)

    weights = [fused[name] for name in _FUSED_ORDER]

    def batch_spec(shape):
        nd = len(shape)
        return pl.BlockSpec((1,) + tuple(shape[1:]),
                            lambda b, nd=nd: (b,) + (0,) * (nd - 1))

    def full_spec(shape):
        nd = len(shape)
        return pl.BlockSpec(tuple(shape), lambda b, nd=nd: (0,) * nd)

    in_specs = ([batch_spec(pos_in.shape), batch_spec(off_in.shape)]
                + [full_spec(w.shape) for w in weights])

    return pl.pallas_call(
        _disc_fused_kernel,
        out_shape=jax.ShapeDtypeStruct((B, T4, 1), jnp.float32),
        grid=(B,),
        in_specs=in_specs,
        out_specs=pl.BlockSpec((1, T4, 1), lambda b: (b, 0, 0)),
        compiler_params=pltpu.CompilerParams(
            dimension_semantics=("parallel",)),   # batch shards across v7x's 2 TCs
    )(pos_in, off_in, *weights)


# ----------------------------------------------------------------------------
# One-time weight preparation (hoisted out of the per-forward path).
# ----------------------------------------------------------------------------
def _conv_selection(t_in, t_out, kernel=4, stride=2, pad=1):
    """0/1 matrices S_k (t_out, t_in) selecting input time index stride*t + k - pad."""
    s = np.zeros((kernel, t_out, t_in), dtype=np.float32)
    for k in range(kernel):
        for t in range(t_out):
            i = stride * t + k - pad
            if 0 <= i < t_in:
                s[k, t, i] = 1.0
    return jnp.asarray(s)


def prepare_fused_params(params, adj, J, T):
    """Precompute kron(adj^T, W) graph weights, per-tap conv matrices, tiled biases
    and the head row-split ONCE, so the jitted forward is just one pallas_call."""
    eye_j = jnp.eye(J, dtype=jnp.float32)
    T2, T4 = T // 2, T // 4

    def conv_taps(w):           # (Cout, Cin, K) -> (K, Cin, Cout): tap-k matrix W[:, :, k].T
        return jnp.transpose(w, (2, 1, 0))

    def row(b):
        return b.reshape(1, -1)

    lin1 = params['lin1_w'].reshape(J, 2 * L4, -1)

    return {
        'S1': _conv_selection(T, T2),
        'S3': _conv_selection(T2, T4),
        'c1p_w': conv_taps(params['conv1_pos_w']), 'c1p_b': row(params['conv1_pos_b']),
        'c1o_w': conv_taps(params['conv1_off_w']), 'c1o_b': row(params['conv1_off_b']),
        'l2n2e_kn': jnp.kron(adj.T, params['l2_n2e_wn']),
        'l2n2e_ke': jnp.kron(eye_j, params['l2_n2e_we']),
        'l2n2e_b': row(jnp.tile(params['l2_n2e_b'], J)),
        'l2e2n_kn': jnp.kron(eye_j, params['l2_e2n_wn']),
        'l2e2n_ke': jnp.kron(adj.T, params['l2_e2n_we']),
        'l2e2n_b': row(jnp.tile(params['l2_e2n_b'], J)),
        'c3p_w': conv_taps(params['conv3_pos_w']), 'c3p_b': row(params['conv3_pos_b']),
        'c3o_w': conv_taps(params['conv3_off_w']), 'c3o_b': row(params['conv3_off_b']),
        'l4n2e_kn': jnp.kron(adj.T, params['l4_n2e_wn']),
        'l4n2e_ke': jnp.kron(eye_j, params['l4_n2e_we']),
        'l4n2e_b': row(jnp.tile(params['l4_n2e_b'], J)),
        'l4e2n_kn': jnp.kron(eye_j, params['l4_e2n_wn']),
        'l4e2n_ke': jnp.kron(adj.T, params['l4_e2n_we']),
        'l4e2n_b': row(jnp.tile(params['l4_e2n_b'], J)),
        'lin1_w_off': lin1[:, :L4, :].reshape(J * L4, -1),   # rows feeding the offset branch
        'lin1_w_inp': lin1[:, L4:, :].reshape(J * L4, -1),   # rows feeding the input branch
        'lin1_b': row(params['lin1_b']),
        'lin2_w': params['lin2_w'],
        'lin2_b': params['lin2_b'].reshape(1, 1),
    }


# ----------------------------------------------------------------------------
# Pure-JAX reference (mirrors the PyTorch forward; used only for the check).
# ----------------------------------------------------------------------------
def calculate_adj_matrix(topology):
    J = len(topology)
    a = np.eye(J, dtype=np.float32)
    for child, parent in enumerate(topology):
        a[child, parent] = 1.0
        a[parent, child] = 1.0
    return jnp.asarray(a)


def _mm_ref(x, w, b, apply_act=True):
    y = x @ w + b[None, :]
    if apply_act:
        y = jnp.where(y >= 0, y, y * NEG_SLOPE)
    return y


def _im2col_1d(x, kernel=4, stride=2, pad=1):
    B, C, T = x.shape
    xp = jnp.pad(x, ((0, 0), (0, 0), (pad, pad)))
    T_out = (T + 2 * pad - kernel) // stride + 1
    cols = [xp[:, :, k:k + stride * T_out:stride] for k in range(kernel)]
    patches = jnp.stack(cols, axis=-1)              # (B, C, T_out, K)
    patches = jnp.transpose(patches, (0, 2, 1, 3))  # (B, T_out, C, K)
    return patches.reshape(B * T_out, C * kernel), T_out


def _conv1d_leaky_ref(x, W, b):
    B = x.shape[0]
    patches, T_out = _im2col_1d(x)
    Wf = W.reshape(W.shape[0], -1).T
    out = _mm_ref(patches, Wf, b, apply_act=True)
    return out.reshape(B, T_out, W.shape[0])


def _node2edge_ref(node, edge, adj, Wn, We, b):
    B, T, J, Cn = node.shape
    Ce = edge.shape[-1]
    Co = Wn.shape[1]
    K = jnp.concatenate(
        [jnp.kron(adj.T, Wn), jnp.kron(jnp.eye(J, dtype=node.dtype), We)], axis=0)
    X = jnp.concatenate(
        [node.reshape(B * T, J * Cn), edge.reshape(B * T, J * Ce)], axis=-1)
    return _mm_ref(X, K, jnp.tile(b, J), apply_act=True).reshape(B, T, J, Co)


def _edge2node_ref(node, edge, adj, Wn, We, b):
    B, T, J, Cn = node.shape
    Ce = edge.shape[-1]
    Co = Wn.shape[1]
    K = jnp.concatenate(
        [jnp.kron(jnp.eye(J, dtype=node.dtype), Wn), jnp.kron(adj.T, We)], axis=0)
    X = jnp.concatenate(
        [node.reshape(B * T, J * Cn), edge.reshape(B * T, J * Ce)], axis=-1)
    return _mm_ref(X, K, jnp.tile(b, J), apply_act=True).reshape(B, T, J, Co)


def discriminator_reference(params, x, adj):
    B, T, J, _ = x.shape
    offset = x[..., -1:]
    inp = x[..., :-1]
    Cp = inp.shape[-1]

    xin = jnp.transpose(inp, (0, 2, 3, 1)).reshape(B, J * Cp, T)
    inp = _conv1d_leaky_ref(xin, params['conv1_pos_w'], params['conv1_pos_b'])
    T2 = T // 2
    inp = inp.reshape(B, T2, J, -1)

    xof = jnp.transpose(offset, (0, 2, 3, 1)).reshape(B, J, T)
    offset = _conv1d_leaky_ref(xof, params['conv1_off_w'], params['conv1_off_b'])
    offset = offset.reshape(B, T2, J, -1)

    offset = _node2edge_ref(inp, offset, adj,
                            params['l2_n2e_wn'], params['l2_n2e_we'], params['l2_n2e_b'])
    inp = _edge2node_ref(inp, offset, adj,
                         params['l2_e2n_wn'], params['l2_e2n_we'], params['l2_e2n_b'])

    xin = jnp.transpose(inp, (0, 2, 3, 1)).reshape(B, J * inp.shape[-1], T2)
    inp = _conv1d_leaky_ref(xin, params['conv3_pos_w'], params['conv3_pos_b'])
    T4 = T2 // 2
    inp = inp.reshape(B, T4, J, -1)

    xof = jnp.transpose(offset, (0, 2, 3, 1)).reshape(B, J * offset.shape[-1], T2)
    offset = _conv1d_leaky_ref(xof, params['conv3_off_w'], params['conv3_off_b'])
    offset = offset.reshape(B, T4, J, -1)

    offset = _node2edge_ref(inp, offset, adj,
                            params['l4_n2e_wn'], params['l4_n2e_we'], params['l4_n2e_b'])
    inp = _edge2node_ref(inp, offset, adj,
                         params['l4_e2n_wn'], params['l4_e2n_we'], params['l4_e2n_b'])

    feat = jnp.concatenate([offset, inp], axis=-1).reshape(B * T4, -1)
    h = _mm_ref(feat, params['lin1_w'], params['lin1_b'], apply_act=True)
    out = _mm_ref(h, params['lin2_w'], params['lin2_b'], apply_act=False)
    return out.reshape(B, T4, 1)


# ----------------------------------------------------------------------------
# Deterministic parameter init (shapes implied by the module __init__)
# ----------------------------------------------------------------------------
def init_params(key, J, c_pos):
    keys = jax.random.split(key, 24)

    def w(k, shape, scale=0.1):
        return scale * jax.random.normal(k, shape, dtype=jnp.float32)

    return {
        'conv1_pos_w': w(keys[0], (L1 * J, c_pos * J, 4)), 'conv1_pos_b': w(keys[1], (L1 * J,)),
        'conv1_off_w': w(keys[2], (L1 * J, 1 * J, 4)),     'conv1_off_b': w(keys[3], (L1 * J,)),
        'l2_n2e_wn': w(keys[4], (L1, L2)), 'l2_n2e_we': w(keys[5], (L1, L2)), 'l2_n2e_b': w(keys[6], (L2,)),
        'l2_e2n_wn': w(keys[7], (L1, L2)), 'l2_e2n_we': w(keys[8], (L2, L2)), 'l2_e2n_b': w(keys[9], (L2,)),
        'conv3_pos_w': w(keys[10], (L3 * J, L2 * J, 4)), 'conv3_pos_b': w(keys[11], (L3 * J,)),
        'conv3_off_w': w(keys[12], (L3 * J, L2 * J, 4)), 'conv3_off_b': w(keys[13], (L3 * J,)),
        'l4_n2e_wn': w(keys[14], (L3, L4)), 'l4_n2e_we': w(keys[15], (L3, L4)), 'l4_n2e_b': w(keys[16], (L4,)),
        'l4_e2n_wn': w(keys[17], (L3, L4)), 'l4_e2n_we': w(keys[18], (L4, L4)), 'l4_e2n_b': w(keys[19], (L4,)),
        'lin1_w': w(keys[20], (J * L4 * 2, 64)), 'lin1_b': w(keys[21], (64,)),
        'lin2_w': w(keys[22], (64, 1)),          'lin2_b': w(keys[23], (1,)),
    }


if __name__ == "__main__":
    topology = [0, 0, 1, 2, 3]        # parent indices -> 5 joints
    J = len(topology)
    B, T, POS_FEAT = 2, 16, 3         # frame count divisible by 4 (two stride-2 convs)

    adj = calculate_adj_matrix(topology)
    key = jax.random.PRNGKey(0)
    kx, kp = jax.random.split(key)
    x = jax.random.normal(kx, (B, T, J, POS_FEAT + 1), dtype=jnp.float32)
    params = init_params(kp, J, POS_FEAT)

    # Build fused weights ONCE (kron / tile / tap-split hoisted out of the forward).
    fused = prepare_fused_params(params, adj, J, T)

    fwd = jax.jit(functools.partial(discriminator_forward_pallas, pos_feat=POS_FEAT))
    out = jax.block_until_ready(fwd(fused, x))

    # correctness vs pure-JAX reference
    ref = discriminator_reference(params, x, adj)
    assert out.shape == (B, T // 4, 1), out.shape
    assert bool(jnp.all(jnp.isfinite(out)))
    assert bool(jnp.allclose(out, ref, atol=1e-3, rtol=1e-3)), float(jnp.max(jnp.abs(out - ref)))

    print("KERNEL_OK")
</pallas_src>

<mosaic_0001>
module attributes {stable_mosaic.version = 11 : i64} {
  func.func @_disc_fused_kernel(%arg0: i32, %arg1: memref<1x16x15xf32, #tpu.memory_space<vmem>>, %arg2: memref<1x16x5xf32, #tpu.memory_space<vmem>>, %arg3: memref<4x8x16xf32, #tpu.memory_space<vmem>>, %arg4: memref<4x4x8xf32, #tpu.memory_space<vmem>>, %arg5: memref<4x15x20xf32, #tpu.memory_space<vmem>>, %arg6: memref<1x20xf32, #tpu.memory_space<vmem>>, %arg7: memref<4x5x20xf32, #tpu.memory_space<vmem>>, %arg8: memref<1x20xf32, #tpu.memory_space<vmem>>, %arg9: memref<20x40xf32, #tpu.memory_space<vmem>>, %arg10: memref<20x40xf32, #tpu.memory_space<vmem>>, %arg11: memref<1x40xf32, #tpu.memory_space<vmem>>, %arg12: memref<20x40xf32, #tpu.memory_space<vmem>>, %arg13: memref<40x40xf32, #tpu.memory_space<vmem>>, %arg14: memref<1x40xf32, #tpu.memory_space<vmem>>, %arg15: memref<4x40x80xf32, #tpu.memory_space<vmem>>, %arg16: memref<1x80xf32, #tpu.memory_space<vmem>>, %arg17: memref<4x40x80xf32, #tpu.memory_space<vmem>>, %arg18: memref<1x80xf32, #tpu.memory_space<vmem>>, %arg19: memref<80x40xf32, #tpu.memory_space<vmem>>, %arg20: memref<80x40xf32, #tpu.memory_space<vmem>>, %arg21: memref<1x40xf32, #tpu.memory_space<vmem>>, %arg22: memref<80x40xf32, #tpu.memory_space<vmem>>, %arg23: memref<40x40xf32, #tpu.memory_space<vmem>>, %arg24: memref<1x40xf32, #tpu.memory_space<vmem>>, %arg25: memref<40x64xf32, #tpu.memory_space<vmem>>, %arg26: memref<40x64xf32, #tpu.memory_space<vmem>>, %arg27: memref<1x64xf32, #tpu.memory_space<vmem>>, %arg28: memref<64x1xf32, #tpu.memory_space<vmem>>, %arg29: memref<1x1xf32, #tpu.memory_space<vmem>>, %arg30: memref<1x4x1xf32, #tpu.memory_space<vmem>>) attributes {dimension_semantics = [#tpu.dimension_semantics<parallel>], iteration_bounds = array<i64: 2>, scalar_prefetch = 0 : i64, scratch_operands = 0 : i64, tpu.core_type = #tpu.core_type<tc>, window_params = [{transform_indices = @transform_0, window_bounds = array<i64: 1, 16, 15>}, {transform_indices = @transform_1, window_bounds = array<i64: 1, 16, 5>}, {pipeline_mode = #tpu.pipeline_mode<synchronous>, transform_indices = @transform_2, window_bounds = array<i64: 4, 8, 16>}, {pipeline_mode = #tpu.pipeline_mode<synchronous>, transform_indices = @transform_3, window_bounds = array<i64: 4, 4, 8>}, {pipeline_mode = #tpu.pipeline_mode<synchronous>, transform_indices = @transform_4, window_bounds = array<i64: 4, 15, 20>}, {pipeline_mode = #tpu.pipeline_mode<synchronous>, transform_indices = @transform_5, window_bounds = array<i64: 1, 20>}, {pipeline_mode = #tpu.pipeline_mode<synchronous>, transform_indices = @transform_6, window_bounds = array<i64: 4, 5, 20>}, {pipeline_mode = #tpu.pipeline_mode<synchronous>, transform_indices = @transform_7, window_bounds = array<i64: 1, 20>}, {pipeline_mode = #tpu.pipeline_mode<synchronous>, transform_indices = @transform_8, window_bounds = array<i64: 20, 40>}, {pipeline_mode = #tpu.pipeline_mode<synchronous>, transform_indices = @transform_9, window_bounds = array<i64: 20, 40>}, {pipeline_mode = #tpu.pipeline_mode<synchronous>, transform_indices = @transform_10, window_bounds = array<i64: 1, 40>}, {pipeline_mode = #tpu.pipeline_mode<synchronous>, transform_indices = @transform_11, window_bounds = array<i64: 20, 40>}, {pipeline_mode = #tpu.pipeline_mode<synchronous>, transform_indices = @transform_12, window_bounds = array<i64: 40, 40>}, {pipeline_mode = #tpu.pipeline_mode<synchronous>, transform_indices = @transform_13, window_bounds = array<i64: 1, 40>}, {pipeline_mode = #tpu.pipeline_mode<synchronous>, transform_indices = @transform_14, window_bounds = array<i64: 4, 40, 80>}, {pipeline_mode = #tpu.pipeline_mode<synchronous>, transform_indices = @transform_15, window_bounds = array<i64: 1, 80>}, {pipeline_mode = #tpu.pipeline_mode<synchronous>, transform_indices = @transform_16, window_bounds = array<i64: 4, 40, 80>}, {pipeline_mode = #tpu.pipeline_mode<synchronous>, transform_indices = @transform_17, window_bounds = array<i64: 1, 80>}, {pipeline_mode = #tpu.pipeline_mode<synchronous>, transform_indices = @transform_18, window_bounds = array<i64: 80, 40>}, {pipeline_mode = #tpu.pipeline_mode<synchronous>, transform_indices = @transform_19, window_bounds = array<i64: 80, 40>}, {pipeline_mode = #tpu.pipeline_mode<synchronous>, transform_indices = @transform_20, window_bounds = array<i64: 1, 40>}, {pipeline_mode = #tpu.pipeline_mode<synchronous>, transform_indices = @transform_21, window_bounds = array<i64: 80, 40>}, {pipeline_mode = #tpu.pipeline_mode<synchronous>, transform_indices = @transform_22, window_bounds = array<i64: 40, 40>}, {pipeline_mode = #tpu.pipeline_mode<synchronous>, transform_indices = @transform_23, window_bounds = array<i64: 1, 40>}, {pipeline_mode = #tpu.pipeline_mode<synchronous>, transform_indices = @transform_24, window_bounds = array<i64: 40, 64>}, {pipeline_mode = #tpu.pipeline_mode<synchronous>, transform_indices = @transform_25, window_bounds = array<i64: 40, 64>}, {pipeline_mode = #tpu.pipeline_mode<synchronous>, transform_indices = @transform_26, window_bounds = array<i64: 1, 64>}, {pipeline_mode = #tpu.pipeline_mode<synchronous>, transform_indices = @transform_27, window_bounds = array<i64: 64, 1>}, {pipeline_mode = #tpu.pipeline_mode<synchronous>, transform_indices = @transform_28, window_bounds = array<i64: 1, 1>}, {transform_indices = @transform_29, window_bounds = array<i64: 1, 4, 1>}]} {
    %c0 = arith.constant 0 : index
    %c0_0 = arith.constant 0 : index
    %c0_1 = arith.constant 0 : index
    %0 = vector.load %arg1[%c0, %c0_0, %c0_1] : memref<1x16x15xf32, #tpu.memory_space<vmem>>, vector<1x16x15xf32>
    %1 = vector.shape_cast %0 : vector<1x16x15xf32> to vector<16x15xf32>
    %c0_2 = arith.constant 0 : index
    %c0_3 = arith.constant 0 : index
    %c0_4 = arith.constant 0 : index
    %2 = vector.load %arg2[%c0_2, %c0_3, %c0_4] : memref<1x16x5xf32, #tpu.memory_space<vmem>>, vector<1x16x5xf32>
    %3 = vector.shape_cast %2 : vector<1x16x5xf32> to vector<16x5xf32>
    %c0_5 = arith.constant 0 : index
    %c0_6 = arith.constant 0 : index
    %c0_7 = arith.constant 0 : index
    %4 = vector.load %arg3[%c0_5, %c0_6, %c0_7] : memref<4x8x16xf32, #tpu.memory_space<vmem>>, vector<1x8x16xf32>
    %5 = vector.shape_cast %4 : vector<1x8x16xf32> to vector<8x16xf32>
    %cst = arith.constant dense<0.000000e+00> : vector<8x15xf32>
    %6 = tpu.matmul %5, %1, %cst {dimension_numbers = #tpu.dot_dimension_numbers<[1], [0], [0], [1], [0, 0, 1, 1], [], []>} : vector<8x16xf32>, vector<16x15xf32>, vector<8x15xf32> -> vector<8x15xf32>
    %c0_8 = arith.constant 0 : index
    %c0_9 = arith.constant 0 : index
    %c0_10 = arith.constant 0 : index
    %7 = vector.load %arg5[%c0_8, %c0_9, %c0_10] : memref<4x15x20xf32, #tpu.memory_space<vmem>>, vector<1x15x20xf32>
    %8 = vector.shape_cast %7 : vector<1x15x20xf32> to vector<15x20xf32>
    %cst_11 = arith.constant dense<0.000000e+00> : vector<8x20xf32>
    %9 = tpu.matmul %6, %8, %cst_11 {dimension_numbers = #tpu.dot_dimension_numbers<[1], [0], [0], [1], [0, 0, 1, 1], [], []>} : vector<8x15xf32>, vector<15x20xf32>, vector<8x20xf32> -> vector<8x20xf32>
    %c1 = arith.constant 1 : index
    %c0_12 = arith.constant 0 : index
    %c0_13 = arith.constant 0 : index
    %10 = vector.load %arg3[%c1, %c0_12, %c0_13] : memref<4x8x16xf32, #tpu.memory_space<vmem>>, vector<1x8x16xf32>
    %11 = vector.shape_cast %10 : vector<1x8x16xf32> to vector<8x16xf32>
    %cst_14 = arith.constant dense<0.000000e+00> : vector<8x15xf32>
    %12 = tpu.matmul %11, %1, %cst_14 {dimension_numbers = #tpu.dot_dimension_numbers<[1], [0], [0], [1], [0, 0, 1, 1], [], []>} : vector<8x16xf32>, vector<16x15xf32>, vector<8x15xf32> -> vector<8x15xf32>
    %c1_15 = arith.constant 1 : index
    %c0_16 = arith.constant 0 : index
    %c0_17 = arith.constant 0 : index
    %13 = vector.load %arg5[%c1_15, %c0_16, %c0_17] : memref<4x15x20xf32, #tpu.memory_space<vmem>>, vector<1x15x20xf32>
    %14 = vector.shape_cast %13 : vector<1x15x20xf32> to vector<15x20xf32>
    %cst_18 = arith.constant dense<0.000000e+00> : vector<8x20xf32>
    %15 = tpu.matmul %12, %14, %cst_18 {dimension_numbers = #tpu.dot_dimension_numbers<[1], [0], [0], [1], [0, 0, 1, 1], [], []>} : vector<8x15xf32>, vector<15x20xf32>, vector<8x20xf32> -> vector<8x20xf32>
    %16 = arith.addf %9, %15 : vector<8x20xf32>
    %c2 = arith.constant 2 : index
    %c0_19 = arith.constant 0 : index
    %c0_20 = arith.constant 0 : index
    %17 = vector.load %arg3[%c2, %c0_19, %c0_20] : memref<4x8x16xf32, #tpu.memory_space<vmem>>, vector<1x8x16xf32>
    %18 = vector.shape_cast %17 : vector<1x8x16xf32> to vector<8x16xf32>
    %cst_21 = arith.constant dense<0.000000e+00> : vector<8x15xf32>
    %19 = tpu.matmul %18, %1, %cst_21 {dimension_numbers = #tpu.dot_dimension_numbers<[1], [0], [0], [1], [0, 0, 1, 1], [], []>} : vector<8x16xf32>, vector<16x15xf32>, vector<8x15xf32> -> vector<8x15xf32>
    %c2_22 = arith.constant 2 : index
    %c0_23 = arith.constant 0 : index
    %c0_24 = arith.constant 0 : index
    %20 = vector.load %arg5[%c2_22, %c0_23, %c0_24] : memref<4x15x20xf32, #tpu.memory_space<vmem>>, vector<1x15x20xf32>
    %21 = vector.shape_cast %20 : vector<1x15x20xf32> to vector<15x20xf32>
    %cst_25 = arith.constant dense<0.000000e+00> : vector<8x20xf32>
    %22 = tpu.matmul %19, %21, %cst_25 {dimension_numbers = #tpu.dot_dimension_numbers<[1], [0], [0], [1], [0, 0, 1, 1], [], []>} : vector<8x15xf32>, vector<15x20xf32>, vector<8x20xf32> -> vector<8x20xf32>
    %23 = arith.addf %16, %22 : vector<8x20xf32>
    %c3 = arith.constant 3 : index
    %c0_26 = arith.constant 0 : index
    %c0_27 = arith.constant 0 : index
    %24 = vector.load %arg3[%c3, %c0_26, %c0_27] : memref<4x8x16xf32, #tpu.memory_space<vmem>>, vector<1x8x16xf32>
    %25 = vector.shape_cast %24 : vector<1x8x16xf32> to vector<8x16xf32>
    %cst_28 = arith.constant dense<0.000000e+00> : vector<8x15xf32>
    %26 = tpu.matmul %25, %1, %cst_28 {dimension_numbers = #tpu.dot_dimension_numbers<[1], [0], [0], [1], [0, 0, 1, 1], [], []>} : vector<8x16xf32>, vector<16x15xf32>, vector<8x15xf32> -> vector<8x15xf32>
    %c3_29 = arith.constant 3 : index
    %c0_30 = arith.constant 0 : index
    %c0_31 = arith.constant 0 : index
    %27 = vector.load %arg5[%c3_29, %c0_30, %c0_31] : memref<4x15x20xf32, #tpu.memory_space<vmem>>, vector<1x15x20xf32>
    %28 = vector.shape_cast %27 : vector<1x15x20xf32> to vector<15x20xf32>
    %cst_32 = arith.constant dense<0.000000e+00> : vector<8x20xf32>
    %29 = tpu.matmul %26, %28, %cst_32 {dimension_numbers = #tpu.dot_dimension_numbers<[1], [0], [0], [1], [0, 0, 1, 1], [], []>} : vector<8x15xf32>, vector<15x20xf32>, vector<8x20xf32> -> vector<8x20xf32>
    %30 = arith.addf %23, %29 : vector<8x20xf32>
    %c0_33 = arith.constant 0 : index
    %c0_34 = arith.constant 0 : index
    %31 = vector.load %arg6[%c0_33, %c0_34] : memref<1x20xf32, #tpu.memory_space<vmem>>, vector<1x20xf32>
    %32 = vector.broadcast %31 : vector<1x20xf32> to vector<8x20xf32>
    %33 = arith.addf %30, %32 : vector<8x20xf32>
    %cst_35 = arith.constant 0.000000e+00 : f32
    %34 = vector.broadcast %cst_35 : f32 to vector<8x20xf32>
    %35 = arith.cmpf oge, %33, %34 : vector<8x20xf32>
    %cst_36 = arith.constant 0.00999999977 : f32
    %36 = vector.broadcast %cst_36 : f32 to vector<8x20xf32>
    %37 = arith.mulf %33, %36 : vector<8x20xf32>
    %38 = arith.select %35, %33, %37 : vector<8x20xi1>, vector<8x20xf32>
    %c0_37 = arith.constant 0 : index
    %c0_38 = arith.constant 0 : index
    %c0_39 = arith.constant 0 : index
    %39 = vector.load %arg3[%c0_37, %c0_38, %c0_39] : memref<4x8x16xf32, #tpu.memory_space<vmem>>, vector<1x8x16xf32>
    %40 = vector.shape_cast %39 : vector<1x8x16xf32> to vector<8x16xf32>
    %cst_40 = arith.constant dense<0.000000e+00> : vector<8x5xf32>
    %41 = tpu.matmul %40, %3, %cst_40 {dimension_numbers = #tpu.dot_dimension_numbers<[1], [0], [0], [1], [0, 0, 1, 1], [], []>} : vector<8x16xf32>, vector<16x5xf32>, vector<8x5xf32> -> vector<8x5xf32>
    %c0_41 = arith.constant 0 : index
    %c0_42 = arith.constant 0 : index
    %c0_43 = arith.constant 0 : index
    %42 = vector.load %arg7[%c0_41, %c0_42, %c0_43] : memref<4x5x20xf32, #tpu.memory_space<vmem>>, vector<1x5x20xf32>
    %43 = vector.shape_cast %42 : vector<1x5x20xf32> to vector<5x20xf32>
    %cst_44 = arith.constant dense<0.000000e+00> : vector<8x20xf32>
    %44 = tpu.matmul %41, %43, %cst_44 {dimension_numbers = #tpu.dot_dimension_numbers<[1], [0], [0], [1], [0, 0, 1, 1], [], []>} : vector<8x5xf32>, vector<5x20xf32>, vector<8x20xf32> -> vector<8x20xf32>
    %c1_45 = arith.constant 1 : index
    %c0_46 = arith.constant 0 : index
    %c0_47 = arith.constant 0 : index
    %45 = vector.load %arg3[%c1_45, %c0_46, %c0_47] : memref<4x8x16xf32, #tpu.memory_space<vmem>>, vector<1x8x16xf32>
    %46 = vector.shape_cast %45 : vector<1x8x16xf32> to vector<8x16xf32>
    %cst_48 = arith.constant dense<0.000000e+00> : vector<8x5xf32>
    %47 = tpu.matmul %46, %3, %cst_48 {dimension_numbers = #tpu.dot_dimension_numbers<[1], [0], [0], [1], [0, 0, 1, 1], [], []>} : vector<8x16xf32>, vector<16x5xf32>, vector<8x5xf32> -> vector<8x5xf32>
    %c1_49 = arith.constant 1 : index
    %c0_50 = arith.constant 0 : index
    %c0_51 = arith.constant 0 : index
    %48 = vector.load %arg7[%c1_49, %c0_50, %c0_51] : memref<4x5x20xf32, #tpu.memory_space<vmem>>, vector<1x5x20xf32>
    %49 = vector.shape_cast %48 : vector<1x5x20xf32> to vector<5x20xf32>
    %cst_52 = arith.constant dense<0.000000e+00> : vector<8x20xf32>
    %50 = tpu.matmul %47, %49, %cst_52 {dimension_numbers = #tpu.dot_dimension_numbers<[1], [0], [0], [1], [0, 0, 1, 1], [], []>} : vector<8x5xf32>, vector<5x20xf32>, vector<8x20xf32> -> vector<8x20xf32>
    %51 = arith.addf %44, %50 : vector<8x20xf32>
    %c2_53 = arith.constant 2 : index
    %c0_54 = arith.constant 0 : index
    %c0_55 = arith.constant 0 : index
    %52 = vector.load %arg3[%c2_53, %c0_54, %c0_55] : memref<4x8x16xf32, #tpu.memory_space<vmem>>, vector<1x8x16xf32>
    %53 = vector.shape_cast %52 : vector<1x8x16xf32> to vector<8x16xf32>
    %cst_56 = arith.constant dense<0.000000e+00> : vector<8x5xf32>
    %54 = tpu.matmul %53, %3, %cst_56 {dimension_numbers = #tpu.dot_dimension_numbers<[1], [0], [0], [1], [0, 0, 1, 1], [], []>} : vector<8x16xf32>, vector<16x5xf32>, vector<8x5xf32> -> vector<8x5xf32>
    %c2_57 = arith.constant 2 : index
    %c0_58 = arith.constant 0 : index
    %c0_59 = arith.constant 0 : index
    %55 = vector.load %arg7[%c2_57, %c0_58, %c0_59] : memref<4x5x20xf32, #tpu.memory_space<vmem>>, vector<1x5x20xf32>
    %56 = vector.shape_cast %55 : vector<1x5x20xf32> to vector<5x20xf32>
    %cst_60 = arith.constant dense<0.000000e+00> : vector<8x20xf32>
    %57 = tpu.matmul %54, %56, %cst_60 {dimension_numbers = #tpu.dot_dimension_numbers<[1], [0], [0], [1], [0, 0, 1, 1], [], []>} : vector<8x5xf32>, vector<5x20xf32>, vector<8x20xf32> -> vector<8x20xf32>
    %58 = arith.addf %51, %57 : vector<8x20xf32>
    %c3_61 = arith.constant 3 : index
    %c0_62 = arith.constant 0 : index
    %c0_63 = arith.constant 0 : index
    %59 = vector.load %arg3[%c3_61, %c0_62, %c0_63] : memref<4x8x16xf32, #tpu.memory_space<vmem>>, vector<1x8x16xf32>
    %60 = vector.shape_cast %59 : vector<1x8x16xf32> to vector<8x16xf32>
    %cst_64 = arith.constant dense<0.000000e+00> : vector<8x5xf32>
    %61 = tpu.matmul %60, %3, %cst_64 {dimension_numbers = #tpu.dot_dimension_numbers<[1], [0], [0], [1], [0, 0, 1, 1], [], []>} : vector<8x16xf32>, vector<16x5xf32>, vector<8x5xf32> -> vector<8x5xf32>
    %c3_65 = arith.constant 3 : index
    %c0_66 = arith.constant 0 : index
    %c0_67 = arith.constant 0 : index
    %62 = vector.load %arg7[%c3_65, %c0_66, %c0_67] : memref<4x5x20xf32, #tpu.memory_space<vmem>>, vector<1x5x20xf32>
    %63 = vector.shape_cast %62 : vector<1x5x20xf32> to vector<5x20xf32>
    %cst_68 = arith.constant dense<0.000000e+00> : vector<8x20xf32>
    %64 = tpu.matmul %61, %63, %cst_68 {dimension_numbers = #tpu.dot_dimension_numbers<[1], [0], [0], [1], [0, 0, 1, 1], [], []>} : vector<8x5xf32>, vector<5x20xf32>, vector<8x20xf32> -> vector<8x20xf32>
    %65 = arith.addf %58, %64 : vector<8x20xf32>
    %c0_69 = arith.constant 0 : index
    %c0_70 = arith.constant 0 : index
    %66 = vector.load %arg8[%c0_69, %c0_70] : memref<1x20xf32, #tpu.memory_space<vmem>>, vector<1x20xf32>
    %67 = vector.broadcast %66 : vector<1x20xf32> to vector<8x20xf32>
    %68 = arith.addf %65, %67 : vector<8x20xf32>
    %cst_71 = arith.constant 0.000000e+00 : f32
    %69 = vector.broadcast %cst_71 : f32 to vector<8x20xf32>
    %70 = arith.cmpf oge, %68, %69 : vector<8x20xf32>
    %cst_72 = arith.constant 0.00999999977 : f32
    %71 = vector.broadcast %cst_72 : f32 to vector<8x20xf32>
    %72 = arith.mulf %68, %71 : vector<8x20xf32>
    %73 = arith.select %70, %68, %72 : vector<8x20xi1>, vector<8x20xf32>
    %c0_73 = arith.constant 0 : index
    %c0_74 = arith.constant 0 : index
    %74 = vector.load %arg9[%c0_73, %c0_74] : memref<20x40xf32, #tpu.memory_space<vmem>>, vector<20x40xf32>
    %cst_75 = arith.constant dense<0.000000e+00> : vector<8x40xf32>
    %75 = tpu.matmul %38, %74, %cst_75 {dimension_numbers = #tpu.dot_dimension_numbers<[1], [0], [0], [1], [0, 0, 1, 1], [], []>} : vector<8x20xf32>, vector<20x40xf32>, vector<8x40xf32> -> vector<8x40xf32>
    %c0_76 = arith.constant 0 : index
    %c0_77 = arith.constant 0 : index
    %76 = vector.load %arg10[%c0_76, %c0_77] : memref<20x40xf32, #tpu.memory_space<vmem>>, vector<20x40xf32>
    %cst_78 = arith.constant dense<0.000000e+00> : vector<8x40xf32>
    %77 = tpu.matmul %73, %76, %cst_78 {dimension_numbers = #tpu.dot_dimension_numbers<[1], [0], [0], [1], [0, 0, 1, 1], [], []>} : vector<8x20xf32>, vector<20x40xf32>, vector<8x40xf32> -> vector<8x40xf32>
    %78 = arith.addf %75, %77 : vector<8x40xf32>
    %c0_79 = arith.constant 0 : index
    %c0_80 = arith.constant 0 : index
    %79 = vector.load %arg11[%c0_79, %c0_80] : memref<1x40xf32, #tpu.memory_space<vmem>>, vector<1x40xf32>
    %80 = vector.broadcast %79 : vector<1x40xf32> to vector<8x40xf32>
    %81 = arith.addf %78, %80 : vector<8x40xf32>
    %cst_81 = arith.constant 0.000000e+00 : f32
    %82 = vector.broadcast %cst_81 : f32 to vector<8x40xf32>
    %83 = arith.cmpf oge, %81, %82 : vector<8x40xf32>
    %cst_82 = arith.constant 0.00999999977 : f32
    %84 = vector.broadcast %cst_82 : f32 to vector<8x40xf32>
    %85 = arith.mulf %81, %84 : vector<8x40xf32>
    %86 = arith.select %83, %81, %85 : vector<8x40xi1>, vector<8x40xf32>
    %c0_83 = arith.constant 0 : index
    %c0_84 = arith.constant 0 : index
    %87 = vector.load %arg12[%c0_83, %c0_84] : memref<20x40xf32, #tpu.memory_space<vmem>>, vector<20x40xf32>
    %cst_85 = arith.constant dense<0.000000e+00> : vector<8x40xf32>
    %88 = tpu.matmul %38, %87, %cst_85 {dimension_numbers = #tpu.dot_dimension_numbers<[1], [0], [0], [1], [0, 0, 1, 1], [], []>} : vector<8x20xf32>, vector<20x40xf32>, vector<8x40xf32> -> vector<8x40xf32>
    %c0_86 = arith.constant 0 : index
    %c0_87 = arith.constant 0 : index
    %89 = vector.load %arg13[%c0_86, %c0_87] : memref<40x40xf32, #tpu.memory_space<vmem>>, vector<40x40xf32>
    %cst_88 = arith.constant dense<0.000000e+00> : vector<8x40xf32>
    %90 = tpu.matmul %86, %89, %cst_88 {dimension_numbers = #tpu.dot_dimension_numbers<[1], [0], [0], [1], [0, 0, 1, 1], [], []>} : vector<8x40xf32>, vector<40x40xf32>, vector<8x40xf32> -> vector<8x40xf32>
    %91 = arith.addf %88, %90 : vector<8x40xf32>
    %c0_89 = arith.constant 0 : index
    %c0_90 = arith.constant 0 : index
    %92 = vector.load %arg14[%c0_89, %c0_90] : memref<1x40xf32, #tpu.memory_space<vmem>>, vector<1x40xf32>
    %93 = vector.broadcast %92 : vector<1x40xf32> to vector<8x40xf32>
    %94 = arith.addf %91, %93 : vector<8x40xf32>
    %cst_91 = arith.constant 0.000000e+00 : f32
    %95 = vector.broadcast %cst_91 : f32 to vector<8x40xf32>
    %96 = arith.cmpf oge, %94, %95 : vector<8x40xf32>
    %cst_92 = arith.constant 0.00999999977 : f32
    %97 = vector.broadcast %cst_92 : f32 to vector<8x40xf32>
    %98 = arith.mulf %94, %97 : vector<8x40xf32>
    %99 = arith.select %96, %94, %98 : vector<8x40xi1>, vector<8x40xf32>
    %c0_93 = arith.constant 0 : index
    %c0_94 = arith.constant 0 : index
    %c0_95 = arith.constant 0 : index
    %100 = vector.load %arg4[%c0_93, %c0_94, %c0_95] : memref<4x4x8xf32, #tpu.memory_space<vmem>>, vector<1x4x8xf32>
    %101 = vector.shape_cast %100 : vector<1x4x8xf32> to vector<4x8xf32>
    %cst_96 = arith.constant dense<0.000000e+00> : vector<4x40xf32>
    %102 = tpu.matmul %101, %99, %cst_96 {dimension_numbers = #tpu.dot_dimension_numbers<[1], [0], [0], [1], [0, 0, 1, 1], [], []>} : vector<4x8xf32>, vector<8x40xf32>, vector<4x40xf32> -> vector<4x40xf32>
    %c0_97 = arith.constant 0 : index
    %c0_98 = arith.constant 0 : index
    %c0_99 = arith.constant 0 : index
    %103 = vector.load %arg15[%c0_97, %c0_98, %c0_99] : memref<4x40x80xf32, #tpu.memory_space<vmem>>, vector<1x40x80xf32>
    %104 = vector.shape_cast %103 : vector<1x40x80xf32> to vector<40x80xf32>
    %cst_100 = arith.constant dense<0.000000e+00> : vector<4x80xf32>
    %105 = tpu.matmul %102, %104, %cst_100 {dimension_numbers = #tpu.dot_dimension_numbers<[1], [0], [0], [1], [0, 0, 1, 1], [], []>} : vector<4x40xf32>, vector<40x80xf32>, vector<4x80xf32> -> vector<4x80xf32>
    %c1_101 = arith.constant 1 : index
    %c0_102 = arith.constant 0 : index
    %c0_103 = arith.constant 0 : index
    %106 = vector.load %arg4[%c1_101, %c0_102, %c0_103] : memref<4x4x8xf32, #tpu.memory_space<vmem>>, vector<1x4x8xf32>
    %107 = vector.shape_cast %106 : vector<1x4x8xf32> to vector<4x8xf32>
    %cst_104 = arith.constant dense<0.000000e+00> : vector<4x40xf32>
    %108 = tpu.matmul %107, %99, %cst_104 {dimension_numbers = #tpu.dot_dimension_numbers<[1], [0], [0], [1], [0, 0, 1, 1], [], []>} : vector<4x8xf32>, vector<8x40xf32>, vector<4x40xf32> -> vector<4x40xf32>
    %c1_105 = arith.constant 1 : index
    %c0_106 = arith.constant 0 : index
    %c0_107 = arith.constant 0 : index
    %109 = vector.load %arg15[%c1_105, %c0_106, %c0_107] : memref<4x40x80xf32, #tpu.memory_space<vmem>>, vector<1x40x80xf32>
    %110 = vector.shape_cast %109 : vector<1x40x80xf32> to vector<40x80xf32>
    %cst_108 = arith.constant dense<0.000000e+00> : vector<4x80xf32>
    %111 = tpu.matmul %108, %110, %cst_108 {dimension_numbers = #tpu.dot_dimension_numbers<[1], [0], [0], [1], [0, 0, 1, 1], [], []>} : vector<4x40xf32>, vector<40x80xf32>, vector<4x80xf32> -> vector<4x80xf32>
    %112 = arith.addf %105, %111 : vector<4x80xf32>
    %c2_109 = arith.constant 2 : index
    %c0_110 = arith.constant 0 : index
    %c0_111 = arith.constant 0 : index
    %113 = vector.load %arg4[%c2_109, %c0_110, %c0_111] : memref<4x4x8xf32, #tpu.memory_space<vmem>>, vector<1x4x8xf32>
    %114 = vector.shape_cast %113 : vector<1x4x8xf32> to vector<4x8xf32>
    %cst_112 = arith.constant dense<0.000000e+00> : vector<4x40xf32>
    %115 = tpu.matmul %114, %99, %cst_112 {dimension_numbers = #tpu.dot_dimension_numbers<[1], [0], [0], [1], [0, 0, 1, 1], [], []>} : vector<4x8xf32>, vector<8x40xf32>, vector<4x40xf32> -> vector<4x40xf32>
    %c2_113 = arith.constant 2 : index
    %c0_114 = arith.constant 0 : index
    %c0_115 = arith.constant 0 : index
    %116 = vector.load %arg15[%c2_113, %c0_114, %c0_115] : memref<4x40x80xf32, #tpu.memory_space<vmem>>, vector<1x40x80xf32>
    %117 = vector.shape_cast %116 : vector<1x40x80xf32> to vector<40x80xf32>
    %cst_116 = arith.constant dense<0.000000e+00> : vector<4x80xf32>
    %118 = tpu.matmul %115, %117, %cst_116 {dimension_numbers = #tpu.dot_dimension_numbers<[1], [0], [0], [1], [0, 0, 1, 1], [], []>} : vector<4x40xf32>, vector<40x80xf32>, vector<4x80xf32> -> vector<4x80xf32>
    %119 = arith.addf %112, %118 : vector<4x80xf32>
    %c3_117 = arith.constant 3 : index
    %c0_118 = arith.constant 0 : index
    %c0_119 = arith.constant 0 : index
    %120 = vector.load %arg4[%c3_117, %c0_118, %c0_119] : memref<4x4x8xf32, #tpu.memory_space<vmem>>, vector<1x4x8xf32>
    %121 = vector.shape_cast %120 : vector<1x4x8xf32> to vector<4x8xf32>
    %cst_120 = arith.constant dense<0.000000e+00> : vector<4x40xf32>
    %122 = tpu.matmul %121, %99, %cst_120 {dimension_numbers = #tpu.dot_dimension_numbers<[1], [0], [0], [1], [0, 0, 1, 1], [], []>} : vector<4x8xf32>, vector<8x40xf32>, vector<4x40xf32> -> vector<4x40xf32>
    %c3_121 = arith.constant 3 : index
    %c0_122 = arith.constant 0 : index
    %c0_123 = arith.constant 0 : index
    %123 = vector.load %arg15[%c3_121, %c0_122, %c0_123] : memref<4x40x80xf32, #tpu.memory_space<vmem>>, vector<1x40x80xf32>
    %124 = vector.shape_cast %123 : vector<1x40x80xf32> to vector<40x80xf32>
    %cst_124 = arith.constant dense<0.000000e+00> : vector<4x80xf32>
    %125 = tpu.matmul %122, %124, %cst_124 {dimension_numbers = #tpu.dot_dimension_numbers<[1], [0], [0], [1], [0, 0, 1, 1], [], []>} : vector<4x40xf32>, vector<40x80xf32>, vector<4x80xf32> -> vector<4x80xf32>
    %126 = arith.addf %119, %125 : vector<4x80xf32>
    %c0_125 = arith.constant 0 : index
    %c0_126 = arith.constant 0 : index
    %127 = vector.load %arg16[%c0_125, %c0_126] : memref<1x80xf32, #tpu.memory_space<vmem>>, vector<1x80xf32>
    %128 = vector.broadcast %127 : vector<1x80xf32> to vector<4x80xf32>
    %129 = arith.addf %126, %128 : vector<4x80xf32>
    %cst_127 = arith.constant 0.000000e+00 : f32
    %130 = vector.broadcast %cst_127 : f32 to vector<4x80xf32>
    %131 = arith.cmpf oge, %129, %130 : vector<4x80xf32>
    %cst_128 = arith.constant 0.00999999977 : f32
    %132 = vector.broadcast %cst_128 : f32 to vector<4x80xf32>
    %133 = arith.mulf %129, %132 : vector<4x80xf32>
    %134 = arith.select %131, %129, %133 : vector<4x80xi1>, vector<4x80xf32>
    %c0_129 = arith.constant 0 : index
    %c0_130 = arith.constant 0 : index
    %c0_131 = arith.constant 0 : index
    %135 = vector.load %arg4[%c0_129, %c0_130, %c0_131] : memref<4x4x8xf32, #tpu.memory_space<vmem>>, vector<1x4x8xf32>
    %136 = vector.shape_cast %135 : vector<1x4x8xf32> to vector<4x8xf32>
    %cst_132 = arith.constant dense<0.000000e+00> : vector<4x40xf32>
    %137 = tpu.matmul %136, %86, %cst_132 {dimension_numbers = #tpu.dot_dimension_numbers<[1], [0], [0], [1], [0, 0, 1, 1], [], []>} : vector<4x8xf32>, vector<8x40xf32>, vector<4x40xf32> -> vector<4x40xf32>
    %c0_133 = arith.constant 0 : index
    %c0_134 = arith.constant 0 : index
    %c0_135 = arith.constant 0 : index
    %138 = vector.load %arg17[%c0_133, %c0_134, %c0_135] : memref<4x40x80xf32, #tpu.memory_space<vmem>>, vector<1x40x80xf32>
    %139 = vector.shape_cast %138 : vector<1x40x80xf32> to vector<40x80xf32>
    %cst_136 = arith.constant dense<0.000000e+00> : vector<4x80xf32>
    %140 = tpu.matmul %137, %139, %cst_136 {dimension_numbers = #tpu.dot_dimension_numbers<[1], [0], [0], [1], [0, 0, 1, 1], [], []>} : vector<4x40xf32>, vector<40x80xf32>, vector<4x80xf32> -> vector<4x80xf32>
    %c1_137 = arith.constant 1 : index
    %c0_138 = arith.constant 0 : index
    %c0_139 = arith.constant 0 : index
    %141 = vector.load %arg4[%c1_137, %c0_138, %c0_139] : memref<4x4x8xf32, #tpu.memory_space<vmem>>, vector<1x4x8xf32>
    %142 = vector.shape_cast %141 : vector<1x4x8xf32> to vector<4x8xf32>
    %cst_140 = arith.constant dense<0.000000e+00> : vector<4x40xf32>
    %143 = tpu.matmul %142, %86, %cst_140 {dimension_numbers = #tpu.dot_dimension_numbers<[1], [0], [0], [1], [0, 0, 1, 1], [], []>} : vector<4x8xf32>, vector<8x40xf32>, vector<4x40xf32> -> vector<4x40xf32>
    %c1_141 = arith.constant 1 : index
    %c0_142 = arith.constant 0 : index
    %c0_143 = arith.constant 0 : index
    %144 = vector.load %arg17[%c1_141, %c0_142, %c0_143] : memref<4x40x80xf32, #tpu.memory_space<vmem>>, vector<1x40x80xf32>
    %145 = vector.shape_cast %144 : vector<1x40x80xf32> to vector<40x80xf32>
    %cst_144 = arith.constant dense<0.000000e+00> : vector<4x80xf32>
    %146 = tpu.matmul %143, %145, %cst_144 {dimension_numbers = #tpu.dot_dimension_numbers<[1], [0], [0], [1], [0, 0, 1, 1], [], []>} : vector<4x40xf32>, vector<40x80xf32>, vector<4x80xf32> -> vector<4x80xf32>
    %147 = arith.addf %140, %146 : vector<4x80xf32>
    %c2_145 = arith.constant 2 : index
    %c0_146 = arith.constant 0 : index
    %c0_147 = arith.constant 0 : index
    %148 = vector.load %arg4[%c2_145, %c0_146, %c0_147] : memref<4x4x8xf32, #tpu.memory_space<vmem>>, vector<1x4x8xf32>
    %149 = vector.shape_cast %148 : vector<1x4x8xf32> to vector<4x8xf32>
    %cst_148 = arith.constant dense<0.000000e+00> : vector<4x40xf32>
    %150 = tpu.matmul %149, %86, %cst_148 {dimension_numbers = #tpu.dot_dimension_numbers<[1], [0], [0], [1], [0, 0, 1, 1], [], []>} : vector<4x8xf32>, vector<8x40xf32>, vector<4x40xf32> -> vector<4x40xf32>
    %c2_149 = arith.constant 2 : index
    %c0_150 = arith.constant 0 : index
    %c0_151 = arith.constant 0 : index
    %151 = vector.load %arg17[%c2_149, %c0_150, %c0_151] : memref<4x40x80xf32, #tpu.memory_space<vmem>>, vector<1x40x80xf32>
    %152 = vector.shape_cast %151 : vector<1x40x80xf32> to vector<40x80xf32>
    %cst_152 = arith.constant dense<0.000000e+00> : vector<4x80xf32>
    %153 = tpu.matmul %150, %152, %cst_152 {dimension_numbers = #tpu.dot_dimension_numbers<[1], [0], [0], [1], [0, 0, 1, 1], [], []>} : vector<4x40xf32>, vector<40x80xf32>, vector<4x80xf32> -> vector<4x80xf32>
    %154 = arith.addf %147, %153 : vector<4x80xf32>
    %c3_153 = arith.constant 3 : index
    %c0_154 = arith.constant 0 : index
    %c0_155 = arith.constant 0 : index
    %155 = vector.load %arg4[%c3_153, %c0_154, %c0_155] : memref<4x4x8xf32, #tpu.memory_space<vmem>>, vector<1x4x8xf32>
    %156 = vector.shape_cast %155 : vector<1x4x8xf32> to vector<4x8xf32>
    %cst_156 = arith.constant dense<0.000000e+00> : vector<4x40xf32>
    %157 = tpu.matmul %156, %86, %cst_156 {dimension_numbers = #tpu.dot_dimension_numbers<[1], [0], [0], [1], [0, 0, 1, 1], [], []>} : vector<4x8xf32>, vector<8x40xf32>, vector<4x40xf32> -> vector<4x40xf32>
    %c3_157 = arith.constant 3 : index
    %c0_158 = arith.constant 0 : index
    %c0_159 = arith.constant 0 : index
    %158 = vector.load %arg17[%c3_157, %c0_158, %c0_159] : memref<4x40x80xf32, #tpu.memory_space<vmem>>, vector<1x40x80xf32>
    %159 = vector.shape_cast %158 : vector<1x40x80xf32> to vector<40x80xf32>
    %cst_160 = arith.constant dense<0.000000e+00> : vector<4x80xf32>
    %160 = tpu.matmul %157, %159, %cst_160 {dimension_numbers = #tpu.dot_dimension_numbers<[1], [0], [0], [1], [0, 0, 1, 1], [], []>} : vector<4x40xf32>, vector<40x80xf32>, vector<4x80xf32> -> vector<4x80xf32>
    %161 = arith.addf %154, %160 : vector<4x80xf32>
    %c0_161 = arith.constant 0 : index
    %c0_162 = arith.constant 0 : index
    %162 = vector.load %arg18[%c0_161, %c0_162] : memref<1x80xf32, #tpu.memory_space<vmem>>, vector<1x80xf32>
    %163 = vector.broadcast %162 : vector<1x80xf32> to vector<4x80xf32>
    %164 = arith.addf %161, %163 : vector<4x80xf32>
    %cst_163 = arith.constant 0.000000e+00 : f32
    %165 = vector.broadcast %cst_163 : f32 to vector<4x80xf32>
    %166 = arith.cmpf oge, %164, %165 : vector<4x80xf32>
    %cst_164 = arith.constant 0.00999999977 : f32
    %167 = vector.broadcast %cst_164 : f32 to vector<4x80xf32>
    %168 = arith.mulf %164, %167 : vector<4x80xf32>
    %169 = arith.select %166, %164, %168 : vector<4x80xi1>, vector<4x80xf32>
    %c0_165 = arith.constant 0 : index
    %c0_166 = arith.constant 0 : index
    %170 = vector.load %arg19[%c0_165, %c0_166] : memref<80x40xf32, #tpu.memory_space<vmem>>, vector<80x40xf32>
    %cst_167 = arith.constant dense<0.000000e+00> : vector<4x40xf32>
    %171 = tpu.matmul %134, %170, %cst_167 {dimension_numbers = #tpu.dot_dimension_numbers<[1], [0], [0], [1], [0, 0, 1, 1], [], []>} : vector<4x80xf32>, vector<80x40xf32>, vector<4x40xf32> -> vector<4x40xf32>
    %c0_168 = arith.constant 0 : index
    %c0_169 = arith.constant 0 : index
    %172 = vector.load %arg20[%c0_168, %c0_169] : memref<80x40xf32, #tpu.memory_space<vmem>>, vector<80x40xf32>
    %cst_170 = arith.constant dense<0.000000e+00> : vector<4x40xf32>
    %173 = tpu.matmul %169, %172, %cst_170 {dimension_numbers = #tpu.dot_dimension_numbers<[1], [0], [0], [1], [0, 0, 1, 1], [], []>} : vector<4x80xf32>, vector<80x40xf32>, vector<4x40xf32> -> vector<4x40xf32>
    %174 = arith.addf %171, %173 : vector<4x40xf32>
    %c0_171 = arith.constant 0 : index
    %c0_172 = arith.constant 0 : index
    %175 = vector.load %arg21[%c0_171, %c0_172] : memref<1x40xf32, #tpu.memory_space<vmem>>, vector<1x40xf32>
    %176 = vector.broadcast %175 : vector<1x40xf32> to vector<4x40xf32>
    %177 = arith.addf %174, %176 : vector<4x40xf32>
    %cst_173 = arith.constant 0.000000e+00 : f32
    %178 = vector.broadcast %cst_173 : f32 to vector<4x40xf32>
    %179 = arith.cmpf oge, %177, %178 : vector<4x40xf32>
    %cst_174 = arith.constant 0.00999999977 : f32
    %180 = vector.broadcast %cst_174 : f32 to vector<4x40xf32>
    %181 = arith.mulf %177, %180 : vector<4x40xf32>
    %182 = arith.select %179, %177, %181 : vector<4x40xi1>, vector<4x40xf32>
    %c0_175 = arith.constant 0 : index
    %c0_176 = arith.constant 0 : index
    %183 = vector.load %arg22[%c0_175, %c0_176] : memref<80x40xf32, #tpu.memory_space<vmem>>, vector<80x40xf32>
    %cst_177 = arith.constant dense<0.000000e+00> : vector<4x40xf32>
    %184 = tpu.matmul %134, %183, %cst_177 {dimension_numbers = #tpu.dot_dimension_numbers<[1], [0], [0], [1], [0, 0, 1, 1], [], []>} : vector<4x80xf32>, vector<80x40xf32>, vector<4x40xf32> -> vector<4x40xf32>
    %c0_178 = arith.constant 0 : index
    %c0_179 = arith.constant 0 : index
    %185 = vector.load %arg23[%c0_178, %c0_179] : memref<40x40xf32, #tpu.memory_space<vmem>>, vector<40x40xf32>
    %cst_180 = arith.constant dense<0.000000e+00> : vector<4x40xf32>
    %186 = tpu.matmul %182, %185, %cst_180 {dimension_numbers = #tpu.dot_dimension_numbers<[1], [0], [0], [1], [0, 0, 1, 1], [], []>} : vector<4x40xf32>, vector<40x40xf32>, vector<4x40xf32> -> vector<4x40xf32>
    %187 = arith.addf %184, %186 : vector<4x40xf32>
    %c0_181 = arith.constant 0 : index
    %c0_182 = arith.constant 0 : index
    %188 = vector.load %arg24[%c0_181, %c0_182] : memref<1x40xf32, #tpu.memory_space<vmem>>, vector<1x40xf32>
    %189 = vector.broadcast %188 : vector<1x40xf32> to vector<4x40xf32>
    %190 = arith.addf %187, %189 : vector<4x40xf32>
    %cst_183 = arith.constant 0.000000e+00 : f32
    %191 = vector.broadcast %cst_183 : f32 to vector<4x40xf32>
    %192 = arith.cmpf oge, %190, %191 : vector<4x40xf32>
    %cst_184 = arith.constant 0.00999999977 : f32
    %193 = vector.broadcast %cst_184 : f32 to vector<4x40xf32>
    %194 = arith.mulf %190, %193 : vector<4x40xf32>
    %195 = arith.select %192, %190, %194 : vector<4x40xi1>, vector<4x40xf32>
    %c0_185 = arith.constant 0 : index
    %c0_186 = arith.constant 0 : index
    %196 = vector.load %arg25[%c0_185, %c0_186] : memref<40x64xf32, #tpu.memory_space<vmem>>, vector<40x64xf32>
    %cst_187 = arith.constant dense<0.000000e+00> : vector<4x64xf32>
    %197 = tpu.matmul %182, %196, %cst_187 {dimension_numbers = #tpu.dot_dimension_numbers<[1], [0], [0], [1], [0, 0, 1, 1], [], []>} : vector<4x40xf32>, vector<40x64xf32>, vector<4x64xf32> -> vector<4x64xf32>
    %c0_188 = arith.constant 0 : index
    %c0_189 = arith.constant 0 : index
    %198 = vector.load %arg26[%c0_188, %c0_189] : memref<40x64xf32, #tpu.memory_space<vmem>>, vector<40x64xf32>
    %cst_190 = arith.constant dense<0.000000e+00> : vector<4x64xf32>
    %199 = tpu.matmul %195, %198, %cst_190 {dimension_numbers = #tpu.dot_dimension_numbers<[1], [0], [0], [1], [0, 0, 1, 1], [], []>} : vector<4x40xf32>, vector<40x64xf32>, vector<4x64xf32> -> vector<4x64xf32>
    %200 = arith.addf %197, %199 : vector<4x64xf32>
    %c0_191 = arith.constant 0 : index
    %c0_192 = arith.constant 0 : index
    %201 = vector.load %arg27[%c0_191, %c0_192] : memref<1x64xf32, #tpu.memory_space<vmem>>, vector<1x64xf32>
    %202 = vector.broadcast %201 : vector<1x64xf32> to vector<4x64xf32>
    %203 = arith.addf %200, %202 : vector<4x64xf32>
    %cst_193 = arith.constant 0.000000e+00 : f32
    %204 = vector.broadcast %cst_193 : f32 to vector<4x64xf32>
    %205 = arith.cmpf oge, %203, %204 : vector<4x64xf32>
    %cst_194 = arith.constant 0.00999999977 : f32
    %206 = vector.broadcast %cst_194 : f32 to vector<4x64xf32>
    %207 = arith.mulf %203, %206 : vector<4x64xf32>
    %208 = arith.select %205, %203, %207 : vector<4x64xi1>, vector<4x64xf32>
    %c0_195 = arith.constant 0 : index
    %c0_196 = arith.constant 0 : index
    %209 = vector.load %arg28[%c0_195, %c0_196] : memref<64x1xf32, #tpu.memory_space<vmem>>, vector<64x1xf32>
    %cst_197 = arith.constant dense<0.000000e+00> : vector<4x1xf32>
    %210 = tpu.matmul %208, %209, %cst_197 {dimension_numbers = #tpu.dot_dimension_numbers<[1], [0], [0], [1], [0, 0, 1, 1], [], []>} : vector<4x64xf32>, vector<64x1xf32>, vector<4x1xf32> -> vector<4x1xf32>
    %c0_198 = arith.constant 0 : index
    %c0_199 = arith.constant 0 : index
    %211 = vector.load %arg29[%c0_198, %c0_199] : memref<1x1xf32, #tpu.memory_space<vmem>>, vector<1x1xf32>
    %212 = vector.broadcast %211 : vector<1x1xf32> to vector<4x1xf32>
    %213 = arith.addf %210, %212 : vector<4x1xf32>
    %c0_200 = arith.constant 0 : index
    %c0_201 = arith.constant 0 : index
    %c0_202 = arith.constant 0 : index
    %214 = vector.load %arg30[%c0_200, %c0_201, %c0_202] : memref<1x4x1xf32, #tpu.memory_space<vmem>>, vector<1x4x1xf32>
    %215 = vector.shape_cast %214 : vector<1x4x1xf32> to vector<4x1xf32>
    %216 = vector.shape_cast %213 : vector<4x1xf32> to vector<1x4x1xf32>
    tpu.vector_store %arg30[%c0_200, %c0_201, %c0_202], %216 {strides = array<i32>} : memref<1x4x1xf32, #tpu.memory_space<vmem>>, vector<1x4x1xf32>,
    return
  }
  func.func @transform_0(%arg0: i32) -> (i32, i32, i32) {
    %c0_i32 = arith.constant 0 : i32
    %c0_i32_0 = arith.constant 0 : i32
    %c0_i32_1 = arith.constant 0 : i32
    return %arg0, %c0_i32, %c0_i32_0 : i32, i32, i32
  }
  func.func @transform_1(%arg0: i32) -> (i32, i32, i32) {
    %c0_i32 = arith.constant 0 : i32
    %c0_i32_0 = arith.constant 0 : i32
    %c0_i32_1 = arith.constant 0 : i32
    return %arg0, %c0_i32, %c0_i32_0 : i32, i32, i32
  }
  func.func @transform_2(%arg0: i32) -> (i32, i32, i32) {
    %c0_i32 = arith.constant 0 : i32
    %c0_i32_0 = arith.constant 0 : i32
    %c0_i32_1 = arith.constant 0 : i32
    %c0_i32_2 = arith.constant 0 : i32
    return %c0_i32, %c0_i32_0, %c0_i32_1 : i32, i32, i32
  }
  func.func @transform_3(%arg0: i32) -> (i32, i32, i32) {
    %c0_i32 = arith.constant 0 : i32
    %c0_i32_0 = arith.constant 0 : i32
    %c0_i32_1 = arith.constant 0 : i32
    %c0_i32_2 = arith.constant 0 : i32
    return %c0_i32, %c0_i32_0, %c0_i32_1 : i32, i32, i32
  }
  func.func @transform_4(%arg0: i32) -> (i32, i32, i32) {
    %c0_i32 = arith.constant 0 : i32
    %c0_i32_0 = arith.constant 0 : i32
    %c0_i32_1 = arith.constant 0 : i32
    %c0_i32_2 = arith.constant 0 : i32
    return %c0_i32, %c0_i32_0, %c0_i32_1 : i32, i32, i32
  }
  func.func @transform_5(%arg0: i32) -> (i32, i32) {
    %c0_i32 = arith.constant 0 : i32
    %c0_i32_0 = arith.constant 0 : i32
    %c0_i32_1 = arith.constant 0 : i32
    return %c0_i32, %c0_i32_0 : i32, i32
  }
  func.func @transform_6(%arg0: i32) -> (i32, i32, i32) {
    %c0_i32 = arith.constant 0 : i32
    %c0_i32_0 = arith.constant 0 : i32
    %c0_i32_1 = arith.constant 0 : i32
    %c0_i32_2 = arith.constant 0 : i32
    return %c0_i32, %c0_i32_0, %c0_i32_1 : i32, i32, i32
  }
  func.func @transform_7(%arg0: i32) -> (i32, i32) {
    %c0_i32 = arith.constant 0 : i32
    %c0_i32_0 = arith.constant 0 : i32
    %c0_i32_1 = arith.constant 0 : i32
    return %c0_i32, %c0_i32_0 : i32, i32
  }
  func.func @transform_8(%arg0: i32) -> (i32, i32) {
    %c0_i32 = arith.constant 0 : i32
    %c0_i32_0 = arith.constant 0 : i32
    %c0_i32_1 = arith.constant 0 : i32
    return %c0_i32, %c0_i32_0 : i32, i32
  }
  func.func @transform_9(%arg0: i32) -> (i32, i32) {
    %c0_i32 = arith.constant 0 : i32
    %c0_i32_0 = arith.constant 0 : i32
    %c0_i32_1 = arith.constant 0 : i32
    return %c0_i32, %c0_i32_0 : i32, i32
  }
  func.func @transform_10(%arg0: i32) -> (i32, i32) {
    %c0_i32 = arith.constant 0 : i32
    %c0_i32_0 = arith.constant 0 : i32
    %c0_i32_1 = arith.constant 0 : i32
    return %c0_i32, %c0_i32_0 : i32, i32
  }
  func.func @transform_11(%arg0: i32) -> (i32, i32) {
    %c0_i32 = arith.constant 0 : i32
    %c0_i32_0 = arith.constant 0 : i32
    %c0_i32_1 = arith.constant 0 : i32
    return %c0_i32, %c0_i32_0 : i32, i32
  }
  func.func @transform_12(%arg0: i32) -> (i32, i32) {
    %c0_i32 = arith.constant 0 : i32
    %c0_i32_0 = arith.constant 0 : i32
    %c0_i32_1 = arith.constant 0 : i32
    return %c0_i32, %c0_i32_0 : i32, i32
  }
  func.func @transform_13(%arg0: i32) -> (i32, i32) {
    %c0_i32 = arith.constant 0 : i32
    %c0_i32_0 = arith.constant 0 : i32
    %c0_i32_1 = arith.constant 0 : i32
    return %c0_i32, %c0_i32_0 : i32, i32
  }
  func.func @transform_14(%arg0: i32) -> (i32, i32, i32) {
    %c0_i32 = arith.constant 0 : i32
    %c0_i32_0 = arith.constant 0 : i32
    %c0_i32_1 = arith.constant 0 : i32
    %c0_i32_2 = arith.constant 0 : i32
    return %c0_i32, %c0_i32_0, %c0_i32_1 : i32, i32, i32
  }
  func.func @transform_15(%arg0: i32) -> (i32, i32) {
    %c0_i32 = arith.constant 0 : i32
    %c0_i32_0 = arith.constant 0 : i32
    %c0_i32_1 = arith.constant 0 : i32
    return %c0_i32, %c0_i32_0 : i32, i32
  }
  func.func @transform_16(%arg0: i32) -> (i32, i32, i32) {
    %c0_i32 = arith.constant 0 : i32
    %c0_i32_0 = arith.constant 0 : i32
    %c0_i32_1 = arith.constant 0 : i32
    %c0_i32_2 = arith.constant 0 : i32
    return %c0_i32, %c0_i32_0, %c0_i32_1 : i32, i32, i32
  }
  func.func @transform_17(%arg0: i32) -> (i32, i32) {
    %c0_i32 = arith.constant 0 : i32
    %c0_i32_0 = arith.constant 0 : i32
    %c0_i32_1 = arith.constant 0 : i32
    return %c0_i32, %c0_i32_0 : i32, i32
  }
  func.func @transform_18(%arg0: i32) -> (i32, i32) {
    %c0_i32 = arith.constant 0 : i32
    %c0_i32_0 = arith.constant 0 : i32
    %c0_i32_1 = arith.constant 0 : i32
    return %c0_i32, %c0_i32_0 : i32, i32
  }
  func.func @transform_19(%arg0: i32) -> (i32, i32) {
    %c0_i32 = arith.constant 0 : i32
    %c0_i32_0 = arith.constant 0 : i32
    %c0_i32_1 = arith.constant 0 : i32
    return %c0_i32, %c0_i32_0 : i32, i32
  }
  func.func @transform_20(%arg0: i32) -> (i32, i32) {
    %c0_i32 = arith.constant 0 : i32
    %c0_i32_0 = arith.constant 0 : i32
    %c0_i32_1 = arith.constant 0 : i32
    return %c0_i32, %c0_i32_0 : i32, i32
  }
  func.func @transform_21(%arg0: i32) -> (i32, i32) {
    %c0_i32 = arith.constant 0 : i32
    %c0_i32_0 = arith.constant 0 : i32
    %c0_i32_1 = arith.constant 0 : i32
    return %c0_i32, %c0_i32_0 : i32, i32
  }
  func.func @transform_22(%arg0: i32) -> (i32, i32) {
    %c0_i32 = arith.constant 0 : i32
    %c0_i32_0 = arith.constant 0 : i32
    %c0_i32_1 = arith.constant 0 : i32
    return %c0_i32, %c0_i32_0 : i32, i32
  }
  func.func @transform_23(%arg0: i32) -> (i32, i32) {
    %c0_i32 = arith.constant 0 : i32
    %c0_i32_0 = arith.constant 0 : i32
    %c0_i32_1 = arith.constant 0 : i32
    return %c0_i32, %c0_i32_0 : i32, i32
  }
  func.func @transform_24(%arg0: i32) -> (i32, i32) {
    %c0_i32 = arith.constant 0 : i32
    %c0_i32_0 = arith.constant 0 : i32
    %c0_i32_1 = arith.constant 0 : i32
    return %c0_i32, %c0_i32_0 : i32, i32
  }
  func.func @transform_25(%arg0: i32) -> (i32, i32) {
    %c0_i32 = arith.constant 0 : i32
    %c0_i32_0 = arith.constant 0 : i32
    %c0_i32_1 = arith.constant 0 : i32
    return %c0_i32, %c0_i32_0 : i32, i32
  }
  func.func @transform_26(%arg0: i32) -> (i32, i32) {
    %c0_i32 = arith.constant 0 : i32
    %c0_i32_0 = arith.constant 0 : i32
    %c0_i32_1 = arith.constant 0 : i32
    return %c0_i32, %c0_i32_0 : i32, i32
  }
  func.func @transform_27(%arg0: i32) -> (i32, i32) {
    %c0_i32 = arith.constant 0 : i32
    %c0_i32_0 = arith.constant 0 : i32
    %c0_i32_1 = arith.constant 0 : i32
    return %c0_i32, %c0_i32_0 : i32, i32
  }
  func.func @transform_28(%arg0: i32) -> (i32, i32) {
    %c0_i32 = arith.constant 0 : i32
    %c0_i32_0 = arith.constant 0 : i32
    %c0_i32_1 = arith.constant 0 : i32
    return %c0_i32, %c0_i32_0 : i32, i32
  }
  func.func @transform_29(%arg0: i32) -> (i32, i32, i32) {
    %c0_i32 = arith.constant 0 : i32
    %c0_i32_0 = arith.constant 0 : i32
    %c0_i32_1 = arith.constant 0 : i32
    return %arg0, %c0_i32, %c0_i32_0 : i32, i32, i32
  }
}

</mosaic_0001>

<bundles_post_ra>
// kernel: discriminator_forward_pallas.1
= control target key start
LH: loop header
LB: loop body
LE: loop exit
PB: predicated region body
PF: predicated region fallthrough
CT: control target
= control target key end

     0   :  { %s5272_s6 = smov 1   ;;  %s5273_s10 = smov 2   ;;  %s5956_s0 = inlined_call_operand.smem [shape: u32[30], index: -1, kind: input, shape index: {}] }
   0x1   :  { %s5314_s5 = sld [smem:[%s5956_s0]]   ;;  %s5274_s14 = smov 3  }
   0x2   :  { %s5319_s9 = sld [smem:[%s5956_s0 + %s5272_s6]]   ;;  %s5275_s18 = smov 4  }
   0x3   :  { %s5324_s13 = sld [smem:[%s5956_s0 + %s5273_s10]]   ;;  %s5276_s22 = smov 5  }
   0x4   :  { %s5329_s17 = sld [smem:[%s5956_s0 + %s5274_s14]]   ;;  %s5277_s26 = smov 6  }
   0x5   :  { %s5334_s21 = sld [smem:[%s5956_s0 + %s5275_s18]]   ;;  %s5278_s30 = smov 7  }
   0x6   :  { %s5339_s25 = sld [smem:[%s5956_s0 + %s5276_s22]]   ;;  %s5279_s4 = smov 8  }
   0x7   :  { %s5344_s29 = sld [smem:[%s5956_s0 + %s5277_s26]]   ;;  %s5280_s10 = smov 9  }
   0x8   :  { %s5349_s3 = sld [smem:[%s5956_s0 + %s5278_s30]]   ;;  %s5281_s15 = smov 10  }
   0x9   :  { %s5354_s8 = sld [smem:[%s5956_s0 + %s5279_s4]]   ;;  %s5282_s20 = smov 11  }
   0xa   :  { %s5359_s14 = sld [smem:[%s5956_s0 + %s5280_s10]]   ;;  %s5283_s26 = smov 12  }
   0xb   :  { %s5364_s19 = sld [smem:[%s5956_s0 + %s5281_s15]]   ;;  %s5284_s1 = smov 13  }
   0xc   :  { %s5369_s24 = sld [smem:[%s5956_s0 + %s5282_s20]]   ;;  %s5285_s7 = smov 14  }
   0xd   :  { %s5374_s30 = sld [smem:[%s5956_s0 + %s5283_s26]]   ;;  %s5286_s15 = smov 15  }
   0xe   :  { %s5379_s6 = sld [smem:[%s5956_s0 + %s5284_s1]]   ;;  %s5287_s22 = smov 16  }
   0xf   :  { %s5384_s12 = sld [smem:[%s5956_s0 + %s5285_s7]]   ;;  %s5288_s28 = smov 17  }
  0x10   :  { %s5389_s20 = sld [smem:[%s5956_s0 + %s5286_s15]]   ;;  %s5289_s7 = smov 18  }
  0x11   :  { %s5394_s27 = sld [smem:[%s5956_s0 + %s5287_s22]]   ;;  %s5290_s15 = smov 19  }
  0x12   :  { %s5399_s4 = sld [smem:[%s5956_s0 + %s5288_s28]]   ;;  %s5291_s22 = smov 20  }
  0x13   :  { %s5292_s28 = smov 21   ;;  %s5300_s1 = smov 29  }
  0x15   :  { %5965 = sst [smem:[#allocation6_spill]] %s5384_s12 }
  0x16   :  { %5966 = sst [smem:[#allocation7_spill]] %s5389_s20 }
  0x17   :  { %5967 = sst [smem:[#allocation8_spill]] %s5394_s27 }
  0x18   :  { %5968 = sst [smem:[#allocation9_spill]] %s5399_s4 }
  0x19   :  { %s5404_s12 = sld [smem:[%s5956_s0 + %s5289_s7]]   ;;  %s5293_s7 = smov 22  }
  0x1a   :  { %s5409_s20 = sld [smem:[%s5956_s0 + %s5290_s15]]   ;;  %s5294_s15 = smov 23  }
  0x1b   :  { %s5414_s27 = sld [smem:[%s5956_s0 + %s5291_s22]]   ;;  %s5295_s22 = smov 24  }
  0x1c   :  { %s5419_s4 = sld [smem:[%s5956_s0 + %s5292_s28]]   ;;  %s5296_s28 = smov 25  }
  0x1f   :  { %5969 = sst [smem:[#allocation10_spill]] %s5404_s12 }
  0x20   :  { %5970 = sst [smem:[#allocation11_spill]] %s5409_s20 }
  0x21   :  { %5971 = sst [smem:[#allocation12_spill]] %s5414_s27 }
  0x22   :  { %5972 = sst [smem:[#allocation13_spill]] %s5419_s4 }
  0x23   :  { %s5424_s12 = sld [smem:[%s5956_s0 + %s5293_s7]]   ;;  %s5297_s7 = smov 26  }
  0x24   :  { %s5429_s20 = sld [smem:[%s5956_s0 + %s5294_s15]]   ;;  %s5298_s15 = smov 27  }
  0x25   :  { %s5434_s27 = sld [smem:[%s5956_s0 + %s5295_s22]]   ;;  %s5299_s22 = smov 28  }
  0x26   :  { %s5439_s4 = sld [smem:[%s5956_s0 + %s5296_s28]]  }
  0x29   :  { %5973 = sst [smem:[#allocation14_spill]] %s5424_s12 }
  0x2a   :  { %5974 = sst [smem:[#allocation15_spill]] %s5429_s20 }
  0x2b   :  { %5975 = sst [smem:[#allocation16_spill]] %s5434_s27 }
  0x2c   :  { %5976 = sst [smem:[#allocation17_spill]] %s5439_s4 }
  0x2d   :  { %s5444_s12 = sld [smem:[%s5956_s0 + %s5297_s7]]  }
  0x2e   :  { %s5449_s20 = sld [smem:[%s5956_s0 + %s5298_s15]]  }
  0x2f   :  { %s4457_s27 = sld [smem:[%s5956_s0 + %s5299_s22]]  }
  0x30   :  { %s5457_s4 = sld [smem:[%s5956_s0 + %s5300_s1]]  }
  0x35   :  { %v64_v0 = vstv %s4457_s27 }
  0x36   :  { %65 = vst [vmem:[#allocation2] sm:$0x1] %v64_v0 }
  0x37   :  { %66 = vsyncpa [#allocation4], 0  ;;  %s5459_s7 = smov 0  }
  0x38 LB: > { %s5465_s10 = sadd.s32 4294967295, %s5270_s7   ;;  %p4461_p0 = scmp.ge.s32.totalorder %s5270_s7, 1  ;;  %s5270_s7 = sphi %s5459_s7, %s72_s7  }
  0x39   : > { %p722_p1 = scmp.lt.s32.totalorder %s5270_s7, 3  ;;  %s5301_s0 = smov [#allocation3]  }
  0x3a   : > { %s737_s27 = sshll.u32 %s5301_s0, 4  ;;  %p5190_p3 = scmp.eq.s32.totalorder %s5465_s10, 0  ;;  %s738_s27 = int_to_ptr.vmem [resolvable:$true] %s737_s27 }
  0x3b   : > { %p5469_p2 = pnand %p4461_p0, %p722_p1  ;;  %s5245_s15 = scalar_lea.vmem %s738_s27, 256 }
  0x3c   : > { %p5246_p7 = scmp.ne.s32.totalorder %s738_s27, %s5245_s15  ;;  %p5253_p10 = scmp.lt.s32.totalorder %s738_s27, %s738_s27 }
  0x3d   : > { %p5186_p4 = pneg %p5469_p2  ;;  %p5254_p11 = scmp.lt.s32.totalorder %s5245_s15, %s5245_s15 }
  0x3f   : > { %p5187_p5 = pnand %p5190_p3, %p5186_p4  ;;  %p5255_p12 = por %p5254_p11, %p5253_p10 }
  0x41   : > { %p5236_p6 = pneg %p5187_p5 }
  0x43   : > { %p5248_p8 = pnand %p5246_p7, %p5236_p6 }
  0x45   : > { %p5249_p9 = pneg %p5248_p8 }
  0x47   : > { %p5256_p13 = pnand %p5255_p12, %p5249_p9 }
  0x49   : > { %5259 = shalt.err (!%p5256_p13)
}
  0x4a   : > { %s5302_s16 = smov 64   ;;  %s5303_s18 = smov 4  }
  0x4b   : > { %5189 = dma.hbm_to_vmem [thread:$0]  (!%p5187_p5), %s5329_s17, 256, %s738_s27, [#allocation4], %s5302_s16, %s5302_s16, %s5303_s18  }
  0x4c   : > { %844 = sbr.rel (%p5469_p2) target bundleno = 3286 (0xcd6), region = 136 }
  0x51   : > { %5265 = dma.done.wait (%p5190_p3), [#allocation4], 256  }
  0x52   : > { %5267 = vsyncadd (%p5190_p3), [#allocation4], 4294967040  ;;  %p924_p0 = scmp.lt.s32.totalorder %s5465_s10, 1  ;;  %v5304_v1 = vmov 0.0   ;;  %vm5305_vm0 = vmmov 0   ;;  %vm1101_vm1 = vcmask 1046528  }
  0x53   : > { %4767 = vmatprep.subr.mxu0 %v5304_v1  ;;  %4771 = vmatprep.mubr.msk.f32.mxu0 %vm5305_vm0, %v5304_v1  ;;  %v942_v4 = vld [vmem:[%s5324_s13] sm:$0xff]  ;;  %vm943_vm2 = vcmask 130048   ;;  %v1018_v5 = vld [vmem:[%s5334_s21 + $0x8] sm:$0x7f]  ;;  %v4475_v8 = vld [vmem:[%s5334_s21 + $0x18] sm:$0x7f] }
  0x54   : > { %s5991_s10 = smov (!%p924_p0, %s5465_s10), 1  ;;  %4788 = vmatprep.subr.mxu1 %v5304_v1  ;;  %4792 = vmatprep.mubr.msk.f32.mxu1 %vm5305_vm0, %v5304_v1  ;;  %v5509_v6 = vld [vmem:[%s5324_s13 + $0x8] sm:$0xff]  ;;  %v1017_v7 = vld [vmem:[%s5334_s21] sm:$0xff]  ;;  %v4474_v9 = vld [vmem:[%s5334_s21 + $0x10] sm:$0xff]  ;;  %vm1097_vm3 = vcmask 121856   ;;  %vm1719_vm4 = vcmask 1044480  }
  0x55   : > { %s4579_s22 = sshll.u32 %s5991_s10, 4  ;;  %4789 = vmatpush3.msk.msra.mxu1 %vm1101_vm1, %v1018_v5  ;;  %v5531_v14 = vld [vmem:[%s5324_s13 + $0x10] sm:$0xff]  ;;  %v5540_v15 = vld [vmem:[%s5324_s13 + $0x18] sm:$0xff]  ;;  %v4483_v16 = vld [vmem:[%s5334_s21 + $0x28] sm:$0x7f]  ;;  %vm1715_vm5 = vcmask 39936  }
  0x56   : > { %s928_s23 = scalar_lea.vmem %s5314_s5, %s4579_s22  ;;  %4790 = vmatprep.subr.mxu1 %v5304_v1  ;;  %v4482_v17 = vld [vmem:[%s5334_s21 + $0x20] sm:$0xff]  ;;  %s933_s26 = scalar_lea.vmem %s5319_s9, %s4579_s22  ;;  %v4489_v25 = vld [vmem:[%s5334_s21 + $0x38] sm:$0x7f]  ;;  %v4488_v27 = vld [vmem:[%s5334_s21 + $0x30] sm:$0xff]  ;;  %vm2188_vm6 = vcmask 1043456   ;;  %vm2184_vm8 = vcmask 162816  }
  0x57   : > { %v939_v2 = vld [vmem:[%s928_s23 + $0x8] sm:$0xff]  ;;  %v938_v3 = vld [vmem:[%s928_s23] sm:$0xff]  ;;  %4791 = vmatpush3.msra.mxu1 %v1017_v7  ;;  %v4501_v45 = vld [vmem:[%s5344_s29 + $0x10] sm:$0x1f]  ;;  %vm2357_vm11 = vcmask 326656   ;;  %s5978_s1 = sld [smem:[#allocation6_spill]] }
  0x58   : > { %4768 = vmatpush3.msra.mxu0 %v939_v2  ;;  %4802 = vmatprep.subr.mxu1 %v5304_v1  ;;  %v941_v18 = vld [vmem:[%s933_s26 + $0x8] sm:$0xff]  ;;  %v940_v19 = vld [vmem:[%s933_s26] sm:$0xff]  ;;  %v4505_v49 = vld [vmem:[%s5344_s29 + $0x18] sm:$0x1f]  ;;  %vm2516_vm13 = vcmask 64512   ;;  %s5979_s28 = sld [smem:[#allocation8_spill]] }
  0x59   : > { %4769 = vmatprep.subr.mxu0 %v5304_v1  ;;  %v4495_v31 = vld [vmem:[%s5344_s29 + $0x8] sm:$0x1f]  ;;  %v1642_v32 = vld [vmem:[%s5344_s29] sm:$0x1f]  ;;  %v2180_v53 = vld [vmem:[%s5354_s8 + $0x10] sm:$0xf] }
  0x5a   : > { %4770 = vmatpush3.msra.mxu0 %v938_v3  ;;  %v4492_v48 = vld [vmem:[%s5339_s25] ss:$0 sm:$0xff]  ;;  %v2179_v55 = vld [vmem:[%s5354_s8 + $0x8] sm:$0xff]  ;;  %v2351_v59 = vld [vmem:[%s5369_s24 + $0x10] sm:$0xf]  ;;  %s5980_s2 = sld [smem:[#allocation11_spill]] }
  0x5b   : > { %4772 = vmatmul.mubr.msk.f32.vlgmr.msra.gmra.mxu0 %vm943_vm2, %v942_v4  ;;  %4774 = vmatprep.subr.mxu0 %v5304_v1  ;;  %v2178_v58 = vld [vmem:[%s5354_s8] sm:$0xff]  ;;  %v2350_v61 = vld [vmem:[%s5369_s24 + $0x8] sm:$0xff]  ;;  %v2183_v63 = vld [vmem:[%s5359_s14 + $0x10] sm:$0xf]  ;;  %s5981_s0 = sld [smem:[#allocation10_spill]]  ;;  %vm3771_vm15 = vcmask 654336  }
  0x5c   : > { %4775 = vmatpush3.msra.mxu0 %v939_v2  ;;  %4778 = vmatprep.mubr.msk.f32.mxu0 %vm5305_vm0, %v5304_v1  ;;  %v2349_v62 = vld [vmem:[%s5369_s24] sm:$0xff]  ;;  %v2182_v0 = vld [vmem:[%s5359_s14 + $0x8] sm:$0xff]  ;;  %s5982_s27 = sld [smem:[#allocation7_spill]] }
  0x5d   : > { %4776 = vmatprep.subr.mxu0 %v5304_v1  ;;  %s5983_s11 = sld [smem:[#allocation13_spill]] }
  0x5e   : > { %4777 = vmatpush3.msra.mxu0 %v938_v3  ;;  %s5984_s15 = sld [smem:[#allocation9_spill]] }
  0x5f   : > { %4779 = vmatmul.mubr.msk.f32.vlgmr.msra.gmra.mxu0 %vm943_vm2, %v5509_v6  ;;  %4781 = vmatprep.subr.mxu0 %v5304_v1  ;;  %s5985_s16 = sld [smem:[#allocation14_spill]] }
  0x60   : > { %4785 = vmatprep.mubr.msk.f32.mxu0 %vm5305_vm0, %v5304_v1  ;;  %4782 = vmatpush3.msk.msra.mxu0 %vm1101_vm1, %v4475_v8  ;;  %v4508_v8 = vld [vmem:[%s5349_s3] ss:$0 sm:$0xff]  ;;  %s5986_s18 = sld [smem:[#allocation12_spill]] }
  0x61   : > { %4783 = vmatprep.subr.mxu0 %v5304_v1  ;;  %s5987_s22 = sld [smem:[#allocation17_spill]] }
  0x62   : > { %4784 = vmatpush3.msra.mxu0 %v4474_v9  ;;  %s5988_s23 = sld [smem:[#allocation15_spill]] }
  0x63   : > { %4795 = vmatprep.subr.mxu0 %v5304_v1  ;;  %s5989_s26 = sld [smem:[#allocation16_spill]] }
 0x11b   : > { %v1013_v10 = vpop.f32.mrf.mxu0 }
 0x11c   : > { %4793 = vmatmul.mubr.msk.f32.vlgmr.msra.gmra.mxu1 %vm1097_vm3, %v1013_v10 }
 0x11d   : > { %v4773_v11 = vpop.f32.mrf.mxu0  ;;  %4806 = vmatprep.mubr.msk.f32.mxu1 %vm5305_vm0, %v5304_v1  ;;  %4803 = vmatpush3.msk.msra.mxu1 %vm1101_vm1, %v4483_v16 }
 0x11e   : > { %4804 = vmatprep.subr.mxu1 %v5304_v1 }
 0x11f   : > { %v1090_v12 = vpop.f32.mrf.mxu0  ;;  %4805 = vmatpush3.msra.mxu1 %v4482_v17 }
 0x120   : > { %4786 = vmatmul.mubr.msk.f32.vlgmr.msra.gmra.mxu0 %vm1097_vm3, %v1090_v12  ;;  %4816 = vmatprep.subr.mxu1 %v5304_v1 }
 0x121   : > { %v4780_v13 = vpop.f32.mrf.mxu0  ;;  %4796 = vmatpush3.msra.mxu0 %v939_v2  ;;  %4799 = vmatprep.mubr.msk.f32.mxu0 %vm5305_vm0, %v5304_v1 }
 0x122   : > { %4797 = vmatprep.subr.mxu0 %v5304_v1 }
 0x123   : > { %4798 = vmatpush3.msra.mxu0 %v938_v3 }
 0x124   : > { %4800 = vmatmul.mubr.msk.f32.vlgmr.msra.gmra.mxu0 %vm943_vm2, %v5531_v14  ;;  %4809 = vmatprep.subr.mxu0 %v5304_v1 }
 0x125   : > { %4810 = vmatpush3.msra.mxu0 %v939_v2  ;;  %4813 = vmatprep.mubr.msk.f32.mxu0 %vm5305_vm0, %v5304_v1  ;;  %v2181_v2 = vld [vmem:[%s5359_s14] sm:$0xff] }
 0x126   : > { %4811 = vmatprep.subr.mxu0 %v5304_v1 }
 0x127   : > { %4812 = vmatpush3.msra.mxu0 %v938_v3 }
 0x128   : > { %4814 = vmatmul.mubr.msk.f32.vlgmr.msra.gmra.mxu0 %vm943_vm2, %v5540_v15  ;;  %4823 = vmatprep.subr.mxu0 %v5304_v1 }
 0x129   : > { %4827 = vmatprep.mubr.msk.f32.mxu0 %vm5305_vm0, %v5304_v1  ;;  %4824 = vmatpush3.msra.mxu0 %v941_v18 }
 0x12a   : > { %4825 = vmatprep.subr.mxu0 %v5304_v1 }
 0x12b   : > { %4826 = vmatpush3.msra.mxu0 %v940_v19 }
 0x12c   : > { %4828 = vmatmul.mubr.msk.f32.vlgmr.msra.gmra.mxu0 %vm943_vm2, %v942_v4  ;;  %4837 = vmatprep.subr.mxu0 %v5304_v1 }
 0x12d   : > { %4839 = vmatprep.mubr.msk.f32.mxu0 %vm5305_vm0, %v5304_v1  ;;  %4838 = vmatpush3.msk.msra.mxu0 %vm1719_vm4, %v4495_v31  ;;  %v4517_v31 = vld [vmem:[%s5379_s6] ss:$0 sm:$0xff] }
 0x12e   : > { %4847 = vmatprep.subr.mxu0 %v5304_v1 }
 0x1dc   : > { %v1247_v20 = vpop.f32.mrf.mxu1 }
 0x1de   : > { %v4794_v21 = vpop.f32.mrf.mxu1 }
 0x1df   : > { %v2353_v21 = vld [vmem:[%s5374_s30 + $0x8] sm:$0xff] }
 0x1e0   : > { %v1171_v22 = vpop.f32.mrf.mxu0 }
 0x1e1   : > { %v1248_v23 = vadd.f32 %v1247_v20, %v1171_v22  ;;  %v2354_v20 = vld [vmem:[%s5374_s30 + $0x10] sm:$0xff]  ;;  %v2352_v22 = vld [vmem:[%s5374_s30] sm:$0xff] }
 0x1e2   : > { %v4787_v24 = vpop.f32.mrf.mxu0 }
 0x1e3   : > { %v4513_v24 = vld [vmem:[%s5364_s19] ss:$0 sm:$0xff] }
 0x1e4   : > { %v1322_v26 = vpop.f32.mrf.mxu0 }
 0x1e5   : > { %4807 = vmatmul.mubr.msk.f32.vlgmr.msra.gmra.mxu1 %vm1097_vm3, %v1322_v26 }
 0x1e6   : > { %v4801_v28 = vpop.f32.mrf.mxu0  ;;  %4817 = vmatpush3.msk.msra.mxu1 %vm1101_vm1, %v4489_v25  ;;  %4820 = vmatprep.mubr.msk.f32.mxu1 %vm5305_vm0, %v5304_v1 }
 0x1e7   : > { %4818 = vmatprep.subr.mxu1 %v5304_v1 }
 0x1e8   : > { %v1477_v29 = vpop.f32.mrf.mxu0  ;;  %4819 = vmatpush3.msra.mxu1 %v4488_v27 }
 0x1e9   : > { %4821 = vmatmul.mubr.msk.f32.vlgmr.msra.gmra.mxu1 %vm1097_vm3, %v1477_v29  ;;  %4830 = vmatprep.subr.mxu1 %v5304_v1 }
 0x1ea   : > { %v4815_v30 = vpop.f32.mrf.mxu0  ;;  %4831 = vmatpush3.msra.mxu1 %v941_v18  ;;  %4834 = vmatprep.mubr.msk.f32.mxu1 %vm5305_vm0, %v5304_v1 }
 0x1eb   : > { %4832 = vmatprep.subr.mxu1 %v5304_v1 }
 0x1ec   : > { %4833 = vmatpush3.msra.mxu1 %v940_v19  ;;  %v1638_v33 = vpop.f32.mrf.mxu0 }
 0x1ed   : > { %4835 = vmatmul.mubr.msk.f32.vlgmr.msra.gmra.mxu1 %vm943_vm2, %v5509_v6  ;;  %4842 = vmatprep.subr.mxu1 %v5304_v1 }
 0x1ee   : > { %4844 = vmatprep.mubr.msk.f32.mxu1 %vm5305_vm0, %v5304_v1  ;;  %4843 = vmatpush3.msk.msra.mxu1 %vm1719_vm4, %v1642_v32  ;;  %v4829_v34 = vpop.f32.mrf.mxu0 }
 0x1ef   : > { %4854 = vmatprep.subr.mxu1 %v5304_v1 }
 0x1f1   : > { %4845 = vmatmul.mubr.msk.f32.vlgmr.msra.gmra.mxu1 %vm1715_vm5, %v1638_v33 }
 0x1f2   : > { %4856 = vmatprep.mubr.msk.f32.mxu1 %vm5305_vm0, %v5304_v1  ;;  %4855 = vmatpush3.msk.msra.mxu1 %vm1719_vm4, %v4501_v45  ;;  %v4521_v45 = vld [vmem:[%s5978_s1 + $0x30] sm:$0xff] }
 0x1f3   : > { %4866 = vmatprep.subr.mxu1 %v5304_v1 }
 0x2a5   : > { %v1401_v35 = vpop.f32.mrf.mxu1 }
 0x2a6   : > { %v1405_v36 = vadd.f32 %v1401_v35, %v1248_v23 }
 0x2a7   : > { %v4808_v37 = vpop.f32.mrf.mxu1 }
 0x2a8   : > { %v5666_v37 = vld [vmem:[#allocation3] sm:$0xf] }
 0x2a9   : > { %v1556_v38 = vpop.f32.mrf.mxu1 }
 0x2aa   : > { %v1560_v39 = vadd.f32 %v1556_v38, %v1405_v36  ;;  %v5664_v36 = vld [vmem:[#allocation3 + $0x4] sm:$0xf] }
 0x2ab   : > { %v4822_v40 = vpop.f32.mrf.mxu1 }
 0x2ac   : > { %v1568_v51 = vadd.f32 %v4492_v48, %v1560_v39  ;;  %v4524_v39 = vld [vmem:[%s5978_s1 + $0x48] sm:$0xff]  ;;  %v2594_v40 = vld [vmem:[%s5978_s1 + $0x20] sm:$0xff] }
 0x2ad   : > { %v1709_v41 = vpop.f32.mrf.mxu1  ;;  %v2590_v48 = vld [vmem:[%s5978_s1] sm:$0xff] }
 0x2ae   : > { %4840 = vmatmul.mubr.msk.f32.vlgmr.msra.gmra.mxu0 %vm1715_vm5, %v1709_v41  ;;  %v1570_v56 = vmul.f32 0.01, %v1568_v51  ;;  %vm1569_vm7 = vcmp.ge.f32.partialorder %v1568_v51, 0.0  ;;  %v4523_v41 = vld [vmem:[%s5978_s1 + $0x40] sm:$0xff] }
 0x2af   : > { %v4836_v42 = vpop.f32.mrf.mxu1  ;;  %4848 = vmatpush3.msra.mxu0 %v941_v18  ;;  %4851 = vmatprep.mubr.msk.f32.mxu0 %vm5305_vm0, %v5304_v1 }
 0x2b0   : > { %4849 = vmatprep.subr.mxu0 %v5304_v1  ;;  %v1571_v60 = vsel %vm1569_vm7, %v1568_v51, %v1570_v56  ;;  %v2593_v42 = vld [vmem:[%s5978_s1 + $0x18] sm:$0xff]  ;;  %v4532_v51 = vld [vmem:[%s5978_s1 + $0x70] sm:$0xff]  ;;  %v4530_v56 = vld [vmem:[%s5978_s1 + $0x60] sm:$0xff] }
 0x2b1   : > { %4850 = vmatpush3.msra.mxu0 %v940_v19  ;;  %v1865_v43 = vpop.f32.mrf.mxu1 }
 0x2b2   : > { %4852 = vmatmul.mubr.msk.f32.vlgmr.msra.gmra.mxu0 %vm943_vm2, %v5531_v14  ;;  %4859 = vmatprep.subr.mxu0 %v5304_v1  ;;  %v2356_v14 = vld [vmem:[%s5374_s30 + $0x20] sm:$0xff] }
 0x2b3   : > { %4860 = vmatpush3.msra.mxu0 %v941_v18  ;;  %4863 = vmatprep.mubr.msk.f32.mxu0 %vm5305_vm0, %v5304_v1  ;;  %v4846_v44 = vpop.f32.mrf.mxu1 }
 0x2b4   : > { %4861 = vmatprep.subr.mxu0 %v5304_v1  ;;  %v2592_v44 = vld [vmem:[%s5978_s1 + $0x10] sm:$0xff] }
 0x2b5   : > { %4862 = vmatpush3.msra.mxu0 %v940_v19  ;;  %v2355_v19 = vld [vmem:[%s5374_s30 + $0x18] sm:$0xff] }
 0x2b6   : > { %4864 = vmatmul.mubr.msk.f32.vlgmr.msra.gmra.mxu0 %vm943_vm2, %v5540_v15  ;;  %4871 = vmatprep.subr.mxu0 %v5304_v1 }
 0x2b7   : > { %4877 = vmatprep.mubr.msk.f32.mxu0 %vm5305_vm0, %v5304_v1  ;;  %4872 = vmatpush3.msk.msra.mxu0 %vm2188_vm6, %v2183_v63  ;;  %v4536_v63 = vld [vmem:[%s5978_s1 + $0x80] sm:$0xff] }
 0x2b8   : > { %4873 = vmatprep.subr.mxu0 %v5304_v1 }
 0x2b9   : > { %4874 = vmatpush3.msra.mxu0 %v2182_v0  ;;  %v4535_v0 = vld [vmem:[%s5978_s1 + $0x78] sm:$0xff] }
 0x2ba   : > { %4875 = vmatprep.subr.mxu0 %v5304_v1 }
 0x2bb   : > { %4876 = vmatpush3.msra.mxu0 %v2181_v2 }
 0x2bc   : > { %4889 = vmatprep.subr.mxu0 %v5304_v1 }
 0x36e   : > { %v1789_v46 = vpop.f32.mrf.mxu0 }
 0x36f   : > { %v1866_v4 = vadd.f32 %v1865_v43, %v1789_v46  ;;  %v4522_v43 = vld [vmem:[%s5978_s1 + $0x38] sm:$0xff]  ;;  %v4520_v46 = vld [vmem:[%s5978_s1 + $0x28] sm:$0xff] }
 0x370   : > { %v4841_v47 = vpop.f32.mrf.mxu0 }
 0x371   : > { %v2591_v47 = vld [vmem:[%s5978_s1 + $0x8] sm:$0xff] }
 0x372   : > { %v1935_v50 = vpop.f32.mrf.mxu0 }
 0x373   : > { %4857 = vmatmul.mubr.msk.f32.vlgmr.msra.gmra.mxu1 %vm1715_vm5, %v1935_v50 }
 0x374   : > { %v4853_v52 = vpop.f32.mrf.mxu0  ;;  %4867 = vmatpush3.msk.msra.mxu1 %vm1719_vm4, %v4505_v49  ;;  %4868 = vmatprep.mubr.msk.f32.mxu1 %vm5305_vm0, %v5304_v1  ;;  %vm4277_vm4 = vcmask 523264  }
 0x375   : > { %4880 = vmatprep.subr.mxu1 %v5304_v1 }
 0x376   : > { %v2084_v54 = vpop.f32.mrf.mxu0 }
 0x377   : > { %4869 = vmatmul.mubr.msk.f32.vlgmr.msra.gmra.mxu1 %vm1715_vm5, %v2084_v54  ;;  %vm4351_vm5 = vcmask 3072  }
 0x378   : > { %4881 = vmatpush3.msk.msra.mxu1 %vm2188_vm6, %v2180_v53  ;;  %v4865_v57 = vpop.f32.mrf.mxu0  ;;  %4886 = vmatprep.mubr.msk.f32.mxu1 %vm5305_vm0, %v5304_v1  ;;  %v5703_v53 = vld [vmem:[#allocation3 + $0x8] sm:$0xf] }
 0x379   : > { %4882 = vmatprep.subr.mxu1 %v5304_v1  ;;  %v5715_v57 = vld [vmem:[#allocation3 + $0xc] sm:$0xf] }
 0x37a   : > { %4883 = vmatpush3.msra.mxu1 %v2179_v55  ;;  %v4531_v55 = vld [vmem:[%s5978_s1 + $0x68] sm:$0xff] }
 0x37b   : > { %4884 = vmatprep.subr.mxu1 %v5304_v1 }
 0x37c   : > { %4885 = vmatpush3.msra.mxu1 %v2178_v58  ;;  %v4539_v58 = vld [vmem:[%s5978_s1 + $0x98] sm:$0xff] }
 0x37d   : > { %4887 = vmatmul.mubr.msk.f32.vlgmr.msra.gmra.mxu1 %vm2184_vm8, %v1571_v60  ;;  %4902 = vmatprep.subr.mxu1 %v5304_v1 }
 0x37e   : > { %4903 = vmatpush3.msk.msra.mxu1 %vm2188_vm6, %v2351_v59  ;;  %4908 = vmatprep.mubr.msk.f32.mxu1 %vm5305_vm0, %v5304_v1  ;;  %v4529_v59 = vld [vmem:[%s5978_s1 + $0x58] sm:$0xff] }
 0x37f   : > { %4904 = vmatprep.subr.mxu1 %v5304_v1 }
 0x380   : > { %4905 = vmatpush3.msra.mxu1 %v2350_v61  ;;  %v4528_v61 = vld [vmem:[%s5978_s1 + $0x50] sm:$0xff] }
 0x381   : > { %4906 = vmatprep.subr.mxu1 %v5304_v1 }
 0x382   : > { %4907 = vmatpush3.msra.mxu1 %v2349_v62  ;;  %v4537_v62 = vld [vmem:[%s5978_s1 + $0x88] sm:$0xff] }
 0x383   : > { %4909 = vmatmul.mubr.msk.f32.vlgmr.msra.gmra.mxu1 %vm2184_vm8, %v1571_v60  ;;  %4911 = vmatprep.subr.mxu1 %v5304_v1  ;;  %v4538_v60 = vld [vmem:[%s5978_s1 + $0x90] sm:$0xff] }
 0x384   : > { %4913 = vmatprep.mubr.msk.f32.mxu1 %vm5305_vm0, %v5304_v1 }
 0x433   : > { %v2013_v3 = vpop.f32.mrf.mxu1 }
 0x434   : > { %v2017_v6 = vadd.f32 %v2013_v3, %v1866_v4 }
 0x435   : > { %v4858_v5 = vpop.f32.mrf.mxu1 }
 0x437   : > { %v2162_v7 = vpop.f32.mrf.mxu1 }
 0x438   : > { %v2166_v9 = vadd.f32 %v2162_v7, %v2017_v6 }
 0x439   : > { %v4870_v10 = vpop.f32.mrf.mxu1 }
 0x43a   : > { %v2174_v11 = vadd.f32 %v4508_v8, %v2166_v9  ;;  %v4548_v10 = vld [vmem:[%s5979_s28 + $0x48] sm:$0xff] }
 0x43c   : > { %vm2175_vm9 = vcmp.ge.f32.partialorder %v2174_v11, 0.0  ;;  %v2176_v12 = vmul.f32 0.01, %v2174_v11 }
 0x43d   : > { %v2334_v13 = vpop.f32.mrf.mxu1 }
 0x43e   : > { %v2177_v15 = vsel %vm2175_vm9, %v2174_v11, %v2176_v12  ;;  %v3217_v12 = vld [vmem:[%s5979_s28 + $0x20] sm:$0xff] }
 0x43f   : > { %v4888_v16 = vpop.f32.mrf.mxu1  ;;  %4878 = vmatmul.mubr.msk.f32.vlgmr.msra.gmra.mxu0 %vm2184_vm8, %v2177_v15  ;;  %v4547_v15 = vld [vmem:[%s5979_s28 + $0x40] sm:$0xff] }
 0x440   : > { %4890 = vmatpush3.msra.mxu0 %v2356_v14  ;;  %4899 = vmatprep.mubr.msk.f32.mxu0 %vm5305_vm0, %v5304_v1  ;;  %v3215_v14 = vld [vmem:[%s5979_s28 + $0x10] sm:$0xff]  ;;  %v4546_v16 = vld [vmem:[%s5979_s28 + $0x38] sm:$0xff] }
 0x441   : > { %4891 = vmatprep.subr.mxu0 %v5304_v1 }
 0x442   : > { %4892 = vmatpush3.msra.mxu0 %v2355_v19  ;;  %v4545_v19 = vld [vmem:[%s5979_s28 + $0x30] sm:$0xff] }
 0x443   : > { %v2500_v17 = vpop.f32.mrf.mxu1  ;;  %4893 = vmatprep.subr.mxu0 %v5304_v1 }
 0x444   : > { %4894 = vmatpush3.msra.mxu0 %v2354_v20  ;;  %v4544_v20 = vld [vmem:[%s5979_s28 + $0x28] sm:$0xff] }
 0x445   : > { %v4910_v18 = vpop.f32.mrf.mxu1  ;;  %4895 = vmatprep.subr.mxu0 %v5304_v1 }
 0x446   : > { %4896 = vmatpush3.msra.mxu0 %v2353_v21  ;;  %v3213_v18 = vld [vmem:[%s5979_s28] sm:$0xff] }
 0x447   : > { %4897 = vmatprep.subr.mxu0 %v5304_v1 }
 0x448   : > { %4898 = vmatpush3.msra.mxu0 %v2352_v22 }
 0x449   : > { %4916 = vmatprep.subr.mxu0 %v5304_v1 }
 0x4ff   : > { %v2258_v23 = vpop.f32.mrf.mxu0 }
 0x500   : > { %v2335_v25 = vadd.f32 %v2334_v13, %v2258_v23  ;;  %v3216_v13 = vld [vmem:[%s5979_s28 + $0x18] sm:$0xff] }
 0x501   : > { %v4879_v26 = vpop.f32.mrf.mxu0 }
 0x502   : > { %v2345_v27 = vadd.f32 %v4513_v24, %v2335_v25  ;;  %v4556_v24 = vld [vmem:[%s5979_s28 + $0x70] sm:$0xff] }
 0x504   : > { %vm2346_vm10 = vcmp.ge.f32.partialorder %v2345_v27, 0.0  ;;  %v2347_v28 = vmul.f32 0.01, %v2345_v27 }
 0x506   : > { %v5657_v29 = vsel %vm2346_vm10, %v2345_v27, %v2347_v28 }
 0x507   : > { %4900 = vmatmul.mubr.msk.f32.vlgmr.msra.gmra.mxu0 %vm2357_vm11, %v5657_v29 }
 0x508   : > { %4918 = vmatprep.mubr.msk.f32.mxu0 %vm5305_vm0, %v5304_v1 }
 0x5c7   : > { %v2427_v30 = vpop.f32.mrf.mxu0 }
 0x5c8   : > { %v2501_v32 = vadd.f32 %v2500_v17, %v2427_v30  ;;  %v3214_v17 = vld [vmem:[%s5979_s28 + $0x8] sm:$0xff] }
 0x5c9   : > { %v4901_v33 = vpop.f32.mrf.mxu0 }
 0x5ca   : > { %v2511_v34 = vadd.f32 %v4517_v31, %v2501_v32  ;;  %v4555_v33 = vld [vmem:[%s5979_s28 + $0x68] sm:$0xff] }
 0x5cc   : > { %v2513_v35 = vmul.f32 0.01, %v2511_v34  ;;  %vm2512_vm12 = vcmp.ge.f32.partialorder %v2511_v34, 0.0 }
 0x5ce   : > { %v2514_v38 = vsel %vm2512_vm12, %v2511_v34, %v2513_v35  ;;  %v4563_v34 = vld [vmem:[%s5979_s28 + $0x98] sm:$0xff]  ;;  %v4562_v35 = vld [vmem:[%s5979_s28 + $0x90] sm:$0xff] }
 0x5cf   : > { %4912 = vmatpush3.msra.mxu1 %v2514_v38  ;;  %4917 = vmatpush3.msra.mxu0 %v2514_v38 }
 0x5d0   : > { %4919 = vmatmul.mubr.msk.f32.vlgmr.msra.gmra.mxu0 %vm2516_vm13, %v5664_v36  ;;  %4914 = vmatmul.mubr.msk.f32.vlgmr.msra.gmra.mxu1 %vm2516_vm13, %v5666_v37 }
 0x5d1   : > { %4921 = vmatprep.subr.mxu1 %v5304_v1  ;;  %4934 = vmatprep.subr.mxu0 %v5304_v1 }
 0x5d2   : > { %4922 = vmatpush3.msra.mxu1 %v4524_v39  ;;  %4935 = vmatpush3.msra.mxu0 %v2594_v40  ;;  %v4560_v39 = vld [vmem:[%s5979_s28 + $0x80] sm:$0xff]  ;;  %v4559_v40 = vld [vmem:[%s5979_s28 + $0x78] sm:$0xff] }
 0x5d3   : > { %4923 = vmatprep.subr.mxu1 %v5304_v1  ;;  %4936 = vmatprep.subr.mxu0 %v5304_v1 }
 0x5d4   : > { %4924 = vmatpush3.msra.mxu1 %v4523_v41  ;;  %4937 = vmatpush3.msra.mxu0 %v2593_v42 }
 0x5d5   : > { %4925 = vmatprep.subr.mxu1 %v5304_v1  ;;  %4938 = vmatprep.subr.mxu0 %v5304_v1 }
 0x5d6   : > { %4926 = vmatpush3.msra.mxu1 %v4522_v43  ;;  %4939 = vmatpush3.msra.mxu0 %v2592_v44 }
 0x5d7   : > { %4927 = vmatprep.subr.mxu1 %v5304_v1  ;;  %4931 = vmatprep.mubr.msk.f32.mxu1 %vm5305_vm0, %v5304_v1 }
 0x5d8   : > { %4928 = vmatpush3.msra.mxu1 %v4521_v45  ;;  %4940 = vmatprep.subr.mxu0 %v5304_v1 }
 0x5d9   : > { %4929 = vmatprep.subr.mxu1 %v5304_v1  ;;  %4944 = vmatprep.mubr.msk.f32.mxu0 %vm5305_vm0, %v5304_v1 }
 0x5da   : > { %4930 = vmatpush3.msra.mxu1 %v4520_v46  ;;  %4941 = vmatpush3.msra.mxu0 %v2591_v47  ;;  %v3770_v46 = vld [vmem:[%s5980_s2 + $0x48] sm:$0xff] }
 0x5db   : > { %4947 = vmatprep.subr.mxu1 %v5304_v1  ;;  %4942 = vmatprep.subr.mxu0 %v5304_v1 }
 0x5dc   : > { %4943 = vmatpush3.msra.mxu0 %v2590_v48  ;;  %v3769_v48 = vld [vmem:[%s5980_s2 + $0x40] sm:$0xff] }
 0x5dd   : > { %4952 = vmatprep.subr.mxu0 %v5304_v1 }
 0x690   : > { %v2666_v49 = vpop.f32.mrf.mxu0  ;;  %v2586_v50 = vpop.f32.mrf.mxu1 }
 0x691   : > { %4932 = vmatmul.mubr.msk.f32.vlgmr.msra.gmra.mxu1 %vm2357_vm11, %v2666_v49  ;;  %4945 = vmatmul.mubr.msk.f32.vlgmr.msra.gmra.mxu0 %vm2357_vm11, %v2586_v50  ;;  %v3760_v50 = vld [vmem:[%s5981_s0 + $0x48] sm:$0xff] }
 0x692   : > { %4948 = vmatpush3.msra.mxu1 %v2514_v38  ;;  %v4920_v52 = vpop.f32.mrf.mxu0  ;;  %4949 = vmatprep.mubr.msk.f32.mxu1 %vm5305_vm0, %v5304_v1  ;;  %v4915_v54 = vpop.f32.mrf.mxu1 }
 0x693   : > { %4965 = vmatprep.subr.mxu1 %v5304_v1  ;;  %4953 = vmatpush3.msra.mxu0 %v4532_v51  ;;  %v3768_v52 = vld [vmem:[%s5980_s2 + $0x38] sm:$0xff] }
 0x694   : > { %4954 = vmatprep.subr.mxu0 %v5304_v1  ;;  %4962 = vmatprep.mubr.msk.f32.mxu0 %vm5305_vm0, %v5304_v1 }
 0x695   : > { %4950 = vmatmul.mubr.msk.f32.vlgmr.msra.gmra.mxu1 %vm2516_vm13, %v5703_v53  ;;  %4955 = vmatpush3.msra.mxu0 %v4531_v55  ;;  %v3767_v55 = vld [vmem:[%s5980_s2 + $0x30] sm:$0xff] }
 0x696   : > { %4966 = vmatpush3.msra.mxu1 %v2514_v38  ;;  %4967 = vmatprep.mubr.msk.f32.mxu1 %vm5305_vm0, %v5304_v1  ;;  %v4552_v38 = vld [vmem:[%s5979_s28 + $0x50] sm:$0xff] }
 0x697   : > { %4956 = vmatprep.subr.mxu0 %v5304_v1  ;;  %4970 = vmatprep.subr.mxu1 %v5304_v1 }
 0x698   : > { %4957 = vmatpush3.msra.mxu0 %v4530_v56  ;;  %v3758_v56 = vld [vmem:[%s5981_s0 + $0x38] sm:$0xff] }
 0x699   : > { %4968 = vmatmul.mubr.msk.f32.vlgmr.msra.gmra.mxu1 %vm2516_vm13, %v5715_v57  ;;  %4958 = vmatprep.subr.mxu0 %v5304_v1 }
 0x69a   : > { %4980 = vmatprep.mubr.msk.f32.mxu1 %vm5305_vm0, %v5304_v1  ;;  %4971 = vmatpush3.msra.mxu1 %v4539_v58  ;;  %v3756_v58 = vld [vmem:[%s5981_s0 + $0x28] sm:$0xff] }
 0x69b   : > { %4959 = vmatpush3.msra.mxu0 %v4529_v59  ;;  %4972 = vmatprep.subr.mxu1 %v5304_v1  ;;  %v4541_v59 = vld [vmem:[%s5982_s27] ss:$0 sm:$0xff]  ;;  %s4470_s27 = sshll.u32 %s5991_s10, 2 }
 0x69c   : > { %4960 = vmatprep.subr.mxu0 %v5304_v1  ;;  %4973 = vmatpush3.msra.mxu1 %v4538_v60  ;;  %v3755_v60 = vld [vmem:[%s5981_s0 + $0x20] sm:$0xff] }
 0x69d   : > { %4961 = vmatpush3.msra.mxu0 %v4528_v61  ;;  %4974 = vmatprep.subr.mxu1 %v5304_v1  ;;  %v3754_v61 = vld [vmem:[%s5981_s0 + $0x18] sm:$0xff] }
 0x69e   : > { %4983 = vmatprep.subr.mxu0 %v5304_v1  ;;  %4975 = vmatpush3.msra.mxu1 %v4537_v62 }
 0x69f   : > { %4976 = vmatprep.subr.mxu1 %v5304_v1 }
 0x6a0   : > { %4977 = vmatpush3.msra.mxu1 %v4536_v63  ;;  %v3753_v63 = vld [vmem:[%s5981_s0 + $0x10] sm:$0xff] }
 0x6a1   : > { %4978 = vmatprep.subr.mxu1 %v5304_v1 }
 0x6a2   : > { %4979 = vmatpush3.msra.mxu1 %v4535_v0  ;;  %v3752_v0 = vld [vmem:[%s5981_s0 + $0x8] sm:$0xff] }
 0x6a3   : > { %4993 = vmatprep.subr.mxu1 %v5304_v1 }
 0x751   : > { %v2745_v2 = vpop.f32.mrf.mxu1  ;;  %v2818_v3 = vpop.f32.mrf.mxu0 }
 0x752   : > { %v2819_v4 = vadd.f32 %v2818_v3, %v2745_v2  ;;  %v3751_v3 = vld [vmem:[%s5981_s0] sm:$0xff] }
 0x753   : > { %v4933_v5 = vpop.f32.mrf.mxu1  ;;  %v4946_v6 = vpop.f32.mrf.mxu0 }
 0x754   : > { %v3937_v6 = vld [vmem:[%s5983_s11 + $0x40] sm:$0xff] }
 0x755   : > { %v2893_v7 = vpop.f32.mrf.mxu1 }
 0x756   : > { %4963 = vmatmul.mubr.msk.f32.vlgmr.msra.gmra.mxu0 %vm2357_vm11, %v2893_v7  ;;  %v3936_v7 = vld [vmem:[%s5983_s11 + $0x38] sm:$0xff] }
 0x757   : > { %4984 = vmatpush3.msra.mxu0 %v5657_v29  ;;  %v4951_v8 = vpop.f32.mrf.mxu1  ;;  %4985 = vmatprep.mubr.msk.f32.mxu0 %vm5305_vm0, %v5304_v1 }
 0x758   : > { %4988 = vmatprep.subr.mxu0 %v5304_v1  ;;  %v3935_v8 = vld [vmem:[%s5983_s11 + $0x30] sm:$0xff] }
 0x759   : > { %v3048_v9 = vpop.f32.mrf.mxu1 }
 0x75a   : > { %4981 = vmatmul.mubr.msk.f32.vlgmr.msra.gmra.mxu1 %vm2357_vm11, %v3048_v9  ;;  %4986 = vmatmul.mubr.msk.f32.vlgmr.msra.gmra.mxu0 %vm2516_vm13, %v5666_v37  ;;  %v4561_v37 = vld [vmem:[%s5979_s28 + $0x88] sm:$0xff] }
 0x75b   : > { %4989 = vmatpush3.msra.mxu0 %v5657_v29  ;;  %4990 = vmatprep.mubr.msk.f32.mxu0 %vm5305_vm0, %v5304_v1  ;;  %v4969_v11 = vpop.f32.mrf.mxu1  ;;  %v3934_v9 = vld [vmem:[%s5983_s11 + $0x28] sm:$0xff] }
 0x75c   : > { %5006 = vmatprep.subr.mxu0 %v5304_v1  ;;  %4994 = vmatpush3.msra.mxu1 %v4548_v10  ;;  %v3933_v10 = vld [vmem:[%s5983_s11 + $0x20] sm:$0xff]  ;;  %v3932_v11 = vld [vmem:[%s5983_s11 + $0x18] sm:$0xff] }
 0x75d   : > { %4995 = vmatprep.subr.mxu1 %v5304_v1  ;;  %5003 = vmatprep.mubr.msk.f32.mxu1 %vm5305_vm0, %v5304_v1 }
 0x75e   : > { %4991 = vmatmul.mubr.msk.f32.vlgmr.msra.gmra.mxu0 %vm2516_vm13, %v5664_v36  ;;  %4996 = vmatpush3.msra.mxu1 %v4547_v15  ;;  %v4553_v36 = vld [vmem:[%s5979_s28 + $0x58] sm:$0xff]  ;;  %v3766_v15 = vld [vmem:[%s5980_s2 + $0x28] sm:$0xff] }
 0x75f   : > { %5007 = vmatpush3.msra.mxu0 %v3217_v12  ;;  %5016 = vmatprep.mubr.msk.f32.mxu0 %vm5305_vm0, %v5304_v1  ;;  %v3931_v12 = vld [vmem:[%s5983_s11 + $0x10] sm:$0xff] }
 0x760   : > { %5008 = vmatprep.subr.mxu0 %v5304_v1  ;;  %4997 = vmatprep.subr.mxu1 %v5304_v1 }
 0x761   : > { %5009 = vmatpush3.msra.mxu0 %v3216_v13  ;;  %4998 = vmatpush3.msra.mxu1 %v4546_v16  ;;  %v3930_v13 = vld [vmem:[%s5983_s11 + $0x8] sm:$0xff]  ;;  %v3765_v16 = vld [vmem:[%s5980_s2 + $0x20] sm:$0xff] }
 0x762   : > { %5010 = vmatprep.subr.mxu0 %v5304_v1  ;;  %4999 = vmatprep.subr.mxu1 %v5304_v1 }
 0x763   : > { %5011 = vmatpush3.msra.mxu0 %v3215_v14  ;;  %5000 = vmatpush3.msra.mxu1 %v4545_v19  ;;  %v3929_v14 = vld [vmem:[%s5983_s11] sm:$0xff]  ;;  %v3762_v19 = vld [vmem:[%s5980_s2 + $0x8] sm:$0xff] }
 0x764   : > { %5012 = vmatprep.subr.mxu0 %v5304_v1  ;;  %5001 = vmatprep.subr.mxu1 %v5304_v1 }
 0x765   : > { %5013 = vmatpush3.msra.mxu0 %v3214_v17  ;;  %5002 = vmatpush3.msra.mxu1 %v4544_v20  ;;  %v3764_v17 = vld [vmem:[%s5980_s2 + $0x18] sm:$0xff]  ;;  %v3761_v20 = vld [vmem:[%s5980_s2] sm:$0xff] }
 0x766   : > { %5014 = vmatprep.subr.mxu0 %v5304_v1  ;;  %5019 = vmatprep.subr.mxu1 %v5304_v1 }
 0x767   : > { %5015 = vmatpush3.msra.mxu0 %v3213_v18  ;;  %v3763_v18 = vld [vmem:[%s5980_s2 + $0x10] sm:$0xff] }
 0x768   : > { %5024 = vmatprep.subr.mxu0 %v5304_v1 }
 0x816   : > { %v2972_v21 = vpop.f32.mrf.mxu0 }
 0x817   : > { %v2976_v22 = vadd.f32 %v2972_v21, %v2819_v4  ;;  %v3938_v4 = vld [vmem:[%s5983_s11 + $0x48] sm:$0xff] }
 0x818   : > { %v4964_v23 = vpop.f32.mrf.mxu0 }
 0x81a   : > { %v3127_v25 = vpop.f32.mrf.mxu1  ;;  %v3209_v26 = vpop.f32.mrf.mxu0 }
 0x81b   : > { %v5777_v27 = vadd.f32 %v3127_v25, %v2976_v22  ;;  %5017 = vmatmul.mubr.msk.f32.vlgmr.msra.gmra.mxu0 %vm2357_vm11, %v3209_v26  ;;  %v4565_v25 = vld [vmem:[%s5984_s15] ss:$0 sm:$0xff]  ;;  %s937_s15 = scalar_lea.vmem %s5457_s4, %s4470_s27 }
 0x81c   : > { %v4987_v28 = vpop.f32.mrf.mxu0  ;;  %v4982_v30 = vpop.f32.mrf.mxu1  ;;  %5025 = vmatpush3.msra.mxu0 %v4556_v24  ;;  %5034 = vmatprep.mubr.msk.f32.mxu0 %vm5305_vm0, %v5304_v1 }
 0x81d   : > { %5026 = vmatprep.subr.mxu0 %v5304_v1  ;;  %v3139_v62 = vadd.f32 %v4541_v59, %v5777_v27 }
 0x81e   : > { %v3284_v31 = vpop.f32.mrf.mxu0  ;;  %5027 = vmatpush3.msra.mxu0 %v4555_v33 }
 0x81f   : > { %5004 = vmatmul.mubr.msk.f32.vlgmr.msra.gmra.mxu1 %vm2357_vm11, %v3284_v31  ;;  %5028 = vmatprep.subr.mxu0 %v5304_v1  ;;  %v3141_v2 = vmul.f32 0.01, %v3139_v62  ;;  %vm3140_vm14 = vcmp.ge.f32.partialorder %v3139_v62, 0.0  ;;  %v3943_v31 = vld [vmem:[%s5985_s16 + $0x20] sm:$0xff] }
 0x820   : > { %5020 = vmatpush3.msra.mxu1 %v5657_v29  ;;  %v4992_v32 = vpop.f32.mrf.mxu0  ;;  %5021 = vmatprep.mubr.msk.f32.mxu1 %vm5305_vm0, %v5304_v1 }
 0x821   : > { %5037 = vmatprep.subr.mxu1 %v5304_v1  ;;  %v3142_v5 = vsel %vm3140_vm14, %v3139_v62, %v3141_v2  ;;  %v4099_v62 = vld [vmem:[%s5989_s26 + $0x8] sm:$0xff]  ;;  %v4268_v2 = vld [vmem:[%s5449_s20 + $0x30] sm:$0xff] }
 0x823   : > { %5022 = vmatmul.mubr.msk.f32.vlgmr.msra.gmra.mxu1 %vm2516_vm13, %v5703_v53  ;;  %v3759_v53 = vld [vmem:[%s5981_s0 + $0x40] sm:$0xff] }
 0x824   : > { %5038 = vmatpush3.msra.mxu1 %v5657_v29  ;;  %5039 = vmatprep.mubr.msk.f32.mxu1 %vm5305_vm0, %v5304_v1  ;;  %v4554_v29 = vld [vmem:[%s5979_s28 + $0x60] sm:$0xff] }
 0x825   : > { %5042 = vmatprep.subr.mxu1 %v5304_v1  ;;  %5029 = vmatpush3.msra.mxu0 %v4554_v29 }
 0x826   : > { %5030 = vmatprep.subr.mxu0 %v5304_v1 }
 0x827   : > { %5040 = vmatmul.mubr.msk.f32.vlgmr.msra.gmra.mxu1 %vm2516_vm13, %v5715_v57  ;;  %5031 = vmatpush3.msra.mxu0 %v4553_v36  ;;  %v3757_v57 = vld [vmem:[%s5981_s0 + $0x30] sm:$0xff]  ;;  %v3942_v36 = vld [vmem:[%s5985_s16 + $0x18] sm:$0xff] }
 0x828   : > { %5052 = vmatprep.mubr.msk.f32.mxu1 %vm5305_vm0, %v5304_v1  ;;  %5043 = vmatpush3.msra.mxu1 %v4563_v34 }
 0x829   : > { %5044 = vmatprep.subr.mxu1 %v5304_v1  ;;  %5032 = vmatprep.subr.mxu0 %v5304_v1 }
 0x82a   : > { %5045 = vmatpush3.msra.mxu1 %v4562_v35  ;;  %5033 = vmatpush3.msra.mxu0 %v4552_v38  ;;  %v3940_v38 = vld [vmem:[%s5985_s16 + $0x8] sm:$0xff] }
 0x82b   : > { %5046 = vmatprep.subr.mxu1 %v5304_v1  ;;  %5055 = vmatprep.subr.mxu0 %v5304_v1 }
 0x82c   : > { %5047 = vmatpush3.msra.mxu1 %v4561_v37  ;;  %v3941_v37 = vld [vmem:[%s5985_s16 + $0x10] sm:$0xff] }
 0x82d   : > { %5048 = vmatprep.subr.mxu1 %v5304_v1 }
 0x82e   : > { %5049 = vmatpush3.msra.mxu1 %v4560_v39  ;;  %v3939_v39 = vld [vmem:[%s5985_s16] sm:$0xff] }
 0x82f   : > { %5050 = vmatprep.subr.mxu1 %v5304_v1 }
 0x830   : > { %5051 = vmatpush3.msra.mxu1 %v4559_v40 }
 0x831   : > { %5078 = vmatprep.subr.mxu1 %v5304_v1 }
 0x8db   : > { %v3436_v41 = vpop.f32.mrf.mxu0 }
 0x8dd   : > { %v5018_v42 = vpop.f32.mrf.mxu0 }
 0x8df   : > { %v3363_v43 = vpop.f32.mrf.mxu1 }
 0x8e0   : > { %v5816_v44 = vadd.f32 %v3436_v41, %v3363_v43  ;;  %v4568_v41 = vld [vmem:[%s5986_s18] ss:$0 sm:$0xff] }
 0x8e1   : > { %v5005_v45 = vpop.f32.mrf.mxu1 }
 0x8e3   : > { %v3506_v47 = vpop.f32.mrf.mxu1 }
 0x8e4   : > { %5035 = vmatmul.mubr.msk.f32.vlgmr.msra.gmra.mxu0 %vm2357_vm11, %v3506_v47 }
 0x8e5   : > { %v5023_v49 = vpop.f32.mrf.mxu1  ;;  %5056 = vmatpush3.msra.mxu0 %v3770_v46  ;;  %5075 = vmatprep.mubr.msk.f32.mxu0 %vm5305_vm0, %v5304_v1  ;;  %v4107_v46 = vld [vmem:[%s5987_s22 + $0x20] sm:$0xff] }
 0x8e6   : > { %5057 = vmatprep.subr.mxu0 %v5304_v1  ;;  %v4105_v49 = vld [vmem:[%s5987_s22 + $0x10] sm:$0xff] }
 0x8e7   : > { %v3656_v51 = vpop.f32.mrf.mxu1  ;;  %5058 = vmatpush3.msra.mxu0 %v3769_v48  ;;  %v4106_v48 = vld [vmem:[%s5987_s22 + $0x18] sm:$0xff] }
 0x8e8   : > { %5053 = vmatmul.mubr.msk.f32.vlgmr.msra.gmra.mxu1 %vm2357_vm11, %v3656_v51  ;;  %5059 = vmatprep.subr.mxu0 %v5304_v1  ;;  %v4103_v51 = vld [vmem:[%s5987_s22] sm:$0xff] }
 0x8e9   : > { %5079 = vmatpush3.msra.mxu1 %v3760_v50  ;;  %v5041_v54 = vpop.f32.mrf.mxu1  ;;  %5098 = vmatprep.mubr.msk.f32.mxu1 %vm5305_vm0, %v5304_v1  ;;  %v4104_v50 = vld [vmem:[%s5987_s22 + $0x8] sm:$0xff] }
 0x8ea   : > { %5080 = vmatprep.subr.mxu1 %v5304_v1  ;;  %5060 = vmatpush3.msra.mxu0 %v3768_v52 }
 0x8eb   : > { %5081 = vmatpush3.msra.mxu1 %v3759_v53  ;;  %5061 = vmatprep.subr.mxu0 %v5304_v1  ;;  %v4571_v53 = vld [vmem:[%s5988_s23] ss:$0 sm:$0xff] }
 0x8ec   : > { %5082 = vmatprep.subr.mxu1 %v5304_v1  ;;  %5062 = vmatpush3.msra.mxu0 %v3767_v55 }
 0x8ed   : > { %5083 = vmatpush3.msra.mxu1 %v3758_v56  ;;  %5063 = vmatprep.subr.mxu0 %v5304_v1 }
 0x8ee   : > { %5084 = vmatprep.subr.mxu1 %v5304_v1  ;;  %5064 = vmatpush3.msra.mxu0 %v3766_v15 }
 0x8ef   : > { %5085 = vmatpush3.msra.mxu1 %v3757_v57  ;;  %5065 = vmatprep.subr.mxu0 %v5304_v1 }
 0x8f0   : > { %5086 = vmatprep.subr.mxu1 %v5304_v1  ;;  %5066 = vmatpush3.msra.mxu0 %v3765_v16 }
 0x8f1   : > { %5087 = vmatpush3.msra.mxu1 %v3756_v58  ;;  %5067 = vmatprep.subr.mxu0 %v5304_v1  ;;  %v4102_v58 = vld [vmem:[%s5989_s26 + $0x20] sm:$0xff] }
 0x8f2   : > { %5088 = vmatprep.subr.mxu1 %v5304_v1  ;;  %5068 = vmatpush3.msra.mxu0 %v3764_v17 }
 0x8f3   : > { %5089 = vmatpush3.msra.mxu1 %v3755_v60  ;;  %5069 = vmatprep.subr.mxu0 %v5304_v1  ;;  %v4101_v60 = vld [vmem:[%s5989_s26 + $0x18] sm:$0xff] }
 0x8f4   : > { %5090 = vmatprep.subr.mxu1 %v5304_v1  ;;  %5070 = vmatpush3.msra.mxu0 %v3763_v18  ;;  %v4575_v18 = vld [vmem:[#allocation2] ss:$0 sm:$0xff] }
 0x8f5   : > { %5091 = vmatpush3.msra.mxu1 %v3754_v61  ;;  %5071 = vmatprep.subr.mxu0 %v5304_v1  ;;  %v4100_v61 = vld [vmem:[%s5989_s26 + $0x10] sm:$0xff] }
 0x8f6   : > { %5092 = vmatprep.subr.mxu1 %v5304_v1  ;;  %5072 = vmatpush3.msra.mxu0 %v3762_v19 }
 0x8f7   : > { %5093 = vmatpush3.msra.mxu1 %v3753_v63  ;;  %5073 = vmatprep.subr.mxu0 %v5304_v1  ;;  %v4098_v63 = vld [vmem:[%s5989_s26] sm:$0xff] }
 0x8f8   : > { %5094 = vmatprep.subr.mxu1 %v5304_v1  ;;  %5074 = vmatpush3.msra.mxu0 %v3761_v20 }
 0x8f9   : > { %5095 = vmatpush3.msra.mxu1 %v3752_v0  ;;  %5101 = vmatprep.subr.mxu0 %v5304_v1  ;;  %v4269_v0 = vld [vmem:[%s5449_s20 + $0x38] sm:$0xff] }
 0x8fa   : > { %5096 = vmatprep.subr.mxu1 %v5304_v1 }
 0x8fb   : > { %5097 = vmatpush3.msra.mxu1 %v3751_v3  ;;  %v4267_v3 = vld [vmem:[%s5449_s20 + $0x28] sm:$0xff] }
 0x8fc   : > { %5099 = vmatmul.mubr.msk.f32.vlgmr.msra.gmra.mxu1 %vm3771_vm15, %v3142_v5  ;;  %5114 = vmatprep.subr.mxu1 %v5304_v1 }
 0x8fd   : > { %5115 = vmatpush3.msra.mxu1 %v3938_v4  ;;  %5134 = vmatprep.mubr.msk.f32.mxu1 %vm5305_vm0, %v5304_v1  ;;  %v4266_v4 = vld [vmem:[%s5449_s20 + $0x20] sm:$0xff] }
 0x8fe   : > { %5116 = vmatprep.subr.mxu1 %v5304_v1 }
 0x8ff   : > { %5117 = vmatpush3.msra.mxu1 %v3937_v6  ;;  %v4264_v6 = vld [vmem:[%s5449_s20 + $0x10] sm:$0xff] }
 0x900   : > { %5118 = vmatprep.subr.mxu1 %v5304_v1 }
 0x901   : > { %5119 = vmatpush3.msra.mxu1 %v3936_v7  ;;  %v4263_v7 = vld [vmem:[%s5449_s20 + $0x8] sm:$0xff] }
 0x902   : > { %5120 = vmatprep.subr.mxu1 %v5304_v1 }
 0x903   : > { %5121 = vmatpush3.msra.mxu1 %v3935_v8  ;;  %v4262_v8 = vld [vmem:[%s5449_s20] sm:$0xff] }
 0x904   : > { %5122 = vmatprep.subr.mxu1 %v5304_v1 }
 0x905   : > { %5123 = vmatpush3.msra.mxu1 %v3934_v9 }
 0x906   : > { %5124 = vmatprep.subr.mxu1 %v5304_v1 }
 0x907   : > { %5125 = vmatpush3.msra.mxu1 %v3933_v10 }
 0x908   : > { %5126 = vmatprep.subr.mxu1 %v5304_v1 }
 0x909   : > { %5127 = vmatpush3.msra.mxu1 %v3932_v11 }
 0x90a   : > { %5128 = vmatprep.subr.mxu1 %v5304_v1 }
 0x90b   : > { %5129 = vmatpush3.msra.mxu1 %v3931_v12  ;;  %v4574_v12 = vld [vmem:[%s5444_s12] ss:$0 sm:$0xff] }
 0x90c   : > { %5130 = vmatprep.subr.mxu1 %v5304_v1 }
 0x90d   : > { %5131 = vmatpush3.msra.mxu1 %v3930_v13 }
 0x90e   : > { %5132 = vmatprep.subr.mxu1 %v5304_v1 }
 0x90f   : > { %5133 = vmatpush3.msra.mxu1 %v3929_v14 }
 0x910   : > { %5135 = vmatmul.mubr.msk.f32.vlgmr.msra.gmra.mxu1 %vm3771_vm15, %v3142_v5  ;;  %5163 = vmatprep.subr.mxu1 %v5304_v1  ;;  %v4265_v5 = vld [vmem:[%s5449_s20 + $0x18] sm:$0xff] }
 0x911   : > { %5179 = vmatprep.mubr.msk.f32.mxu1 %vm5305_vm0, %v5304_v1  ;;  %5164 = vmatpush3.msra.mxu1 %v4269_v0 }
 0x912   : > { %5165 = vmatprep.subr.mxu1 %v5304_v1 }
 0x913   : > { %5166 = vmatpush3.msra.mxu1 %v4268_v2 }
 0x914   : > { %5167 = vmatprep.subr.mxu1 %v5304_v1 }
 0x915   : > { %5168 = vmatpush3.msra.mxu1 %v4267_v3 }
 0x916   : > { %5169 = vmatprep.subr.mxu1 %v5304_v1 }
 0x917   : > { %5170 = vmatpush3.msra.mxu1 %v4266_v4 }
 0x918   : > { %5171 = vmatprep.subr.mxu1 %v5304_v1 }
 0x919   : > { %5172 = vmatpush3.msra.mxu1 %v4265_v5 }
 0x91a   : > { %5173 = vmatprep.subr.mxu1 %v5304_v1 }
 0x91b   : > { %5174 = vmatpush3.msra.mxu1 %v4264_v6 }
 0x91c   : > { %5175 = vmatprep.subr.mxu1 %v5304_v1 }
 0x91d   : > { %5176 = vmatpush3.msra.mxu1 %v4263_v7 }
 0x91e   : > { %5177 = vmatprep.subr.mxu1 %v5304_v1 }
 0x91f   : > { %5178 = vmatpush3.msra.mxu1 %v4262_v8 }
 0x9a4   : > { %v3585_v21 = vpop.f32.mrf.mxu0 }
 0x9a5   : > { %v3589_v23 = vadd.f32 %v3585_v21, %v5816_v44 }
 0x9a6   : > { %v5036_v22 = vpop.f32.mrf.mxu0 }
 0x9a8   : > { %v3735_v24 = vpop.f32.mrf.mxu1 }
 0x9a9   : > { %v3739_v26 = vadd.f32 %v3735_v24, %v3589_v23 }
 0x9aa   : > { %v5054_v27 = vpop.f32.mrf.mxu1 }
 0x9ab   : > { %v3747_v28 = vadd.f32 %v4565_v25, %v3739_v26 }
 0x9ad   : > { %vm3748_vm1 = vcmp.ge.f32.partialorder %v3747_v28, 0.0  ;;  %v3749_v30 = vmul.f32 0.01, %v3747_v28 }
 0x9af   : > { %v3750_v32 = vsel %vm3748_vm1, %v3747_v28, %v3749_v30 }
 0x9b0   : > { %5076 = vmatmul.mubr.msk.f32.vlgmr.msra.gmra.mxu0 %vm3771_vm15, %v3750_v32 }
 0x9b1   : > { %5102 = vmatpush3.msra.mxu0 %v3943_v31  ;;  %5111 = vmatprep.mubr.msk.f32.mxu0 %vm5305_vm0, %v5304_v1 }
 0x9b2   : > { %5103 = vmatprep.subr.mxu0 %v5304_v1 }
 0x9b3   : > { %5104 = vmatpush3.msra.mxu0 %v3942_v36 }
 0x9b4   : > { %5105 = vmatprep.subr.mxu0 %v5304_v1 }
 0x9b5   : > { %5106 = vmatpush3.msra.mxu0 %v3941_v37 }
 0x9b6   : > { %5107 = vmatprep.subr.mxu0 %v5304_v1 }
 0x9b7   : > { %5108 = vmatpush3.msra.mxu0 %v3940_v38 }
 0x9b8   : > { %5109 = vmatprep.subr.mxu0 %v5304_v1 }
 0x9b9   : > { %5110 = vmatpush3.msra.mxu0 %v3939_v39 }
 0x9ba   : > { %5137 = vmatprep.subr.mxu0 %v5304_v1 }
 0x9bc   : > { %v3914_v33 = vpop.f32.mrf.mxu1 }
 0x9be   : > { %v5100_v34 = vpop.f32.mrf.mxu1 }
 0x9d0   : > { %v4083_v29 = vpop.f32.mrf.mxu1 }
 0x9d2   : > { %v5136_v35 = vpop.f32.mrf.mxu1 }
 0xa70   : > { %v3841_v40 = vpop.f32.mrf.mxu0 }
 0xa71   : > { %v3915_v42 = vadd.f32 %v3914_v33, %v3841_v40 }
 0xa72   : > { %v5077_v43 = vpop.f32.mrf.mxu0 }
 0xa73   : > { %v3925_v44 = vadd.f32 %v4568_v41, %v3915_v42 }
 0xa75   : > { %vm3926_vm2 = vcmp.ge.f32.partialorder %v3925_v44, 0.0  ;;  %v3927_v45 = vmul.f32 0.01, %v3925_v44 }
 0xa77   : > { %v3928_v47 = vsel %vm3926_vm2, %v3925_v44, %v3927_v45 }
 0xa78   : > { %5112 = vmatmul.mubr.msk.f32.vlgmr.msra.gmra.mxu0 %vm2357_vm11, %v3928_v47 }
 0xa79   : > { %5138 = vmatpush3.msra.mxu0 %v4107_v46  ;;  %5147 = vmatprep.mubr.msk.f32.mxu0 %vm5305_vm0, %v5304_v1 }
 0xa7a   : > { %5139 = vmatprep.subr.mxu0 %v5304_v1 }
 0xa7b   : > { %5140 = vmatpush3.msra.mxu0 %v4106_v48 }
 0xa7c   : > { %5141 = vmatprep.subr.mxu0 %v5304_v1 }
 0xa7d   : > { %5142 = vmatpush3.msra.mxu0 %v4105_v49 }
 0xa7e   : > { %5143 = vmatprep.subr.mxu0 %v5304_v1 }
 0xa7f   : > { %5144 = vmatpush3.msra.mxu0 %v4104_v50 }
 0xa80   : > { %5145 = vmatprep.subr.mxu0 %v5304_v1 }
 0xa81   : > { %5146 = vmatpush3.msra.mxu0 %v4103_v51 }
 0xa82   : > { %5150 = vmatprep.subr.mxu0 %v5304_v1 }
 0xb38   : > { %v4013_v52 = vpop.f32.mrf.mxu0 }
 0xb39   : > { %v4084_v54 = vadd.f32 %v4083_v29, %v4013_v52 }
 0xb3a   : > { %v5113_v55 = vpop.f32.mrf.mxu0 }
 0xb3b   : > { %v4094_v56 = vadd.f32 %v4571_v53, %v4084_v54 }
 0xb3d   : > { %vm4095_vm3 = vcmp.ge.f32.partialorder %v4094_v56, 0.0  ;;  %v4096_v57 = vmul.f32 0.01, %v4094_v56 }
 0xb3f   : > { %v4097_v59 = vsel %vm4095_vm3, %v4094_v56, %v4096_v57 }
 0xb40   : > { %5148 = vmatmul.mubr.msk.f32.vlgmr.msra.gmra.mxu0 %vm2357_vm11, %v4097_v59 }
 0xb41   : > { %5151 = vmatpush3.msra.mxu0 %v4102_v58  ;;  %5160 = vmatprep.mubr.msk.f32.mxu0 %vm5305_vm0, %v5304_v1 }
 0xb42   : > { %5152 = vmatprep.subr.mxu0 %v5304_v1 }
 0xb43   : > { %5153 = vmatpush3.msra.mxu0 %v4101_v60 }
 0xb44   : > { %5154 = vmatprep.subr.mxu0 %v5304_v1 }
 0xb45   : > { %5155 = vmatpush3.msra.mxu0 %v4100_v61 }
 0xb46   : > { %5156 = vmatprep.subr.mxu0 %v5304_v1 }
 0xb47   : > { %5157 = vmatpush3.msra.mxu0 %v4099_v62 }
 0xb48   : > { %5158 = vmatprep.subr.mxu0 %v5304_v1 }
 0xb49   : > { %5159 = vmatpush3.msra.mxu0 %v4098_v63 }
 0xb4a   : > { %5161 = vmatmul.mubr.msk.f32.vlgmr.msra.gmra.mxu0 %vm2357_vm11, %v3928_v47 }
 0xc00   : > { %v4177_v9 = vpop.f32.mrf.mxu0 }
 0xc02   : > { %v5149_v10 = vpop.f32.mrf.mxu0 }
 0xc0a   : > { %v4247_v11 = vpop.f32.mrf.mxu0 }
 0xc0b   : > { %v4248_v13 = vadd.f32 %v4247_v11, %v4177_v9 }
 0xc0c   : > { %v5162_v14 = vpop.f32.mrf.mxu0 }
 0xc0d   : > { %v4258_v15 = vadd.f32 %v4574_v12, %v4248_v13 }
 0xc0f   : > { %vm4259_vm0 = vcmp.ge.f32.partialorder %v4258_v15, 0.0  ;;  %v4260_v16 = vmul.f32 0.01, %v4258_v15 }
 0xc11   : > { %v4261_v17 = vsel %vm4259_vm0, %v4258_v15, %v4260_v16 }
 0xc12   : > { %5180 = vmatmul.mubr.msk.f32.vlgmr.msra.gmra.mxu1 %vm4277_vm4, %v4261_v17 }
 0xcd2   : > { %v4347_v19 = vpop.f32.mrf.mxu1 }
 0xcd3   : > { %v4348_v1 = vadd.f32 %v4575_v18, %v4347_v19 }
 0xcd4   : > { %v5181_v20 = vpop.f32.mrf.mxu1 }
 0xcd5   : > { %4352 = vst.msk [vmem:[%s937_s15] sm:$0xf] %vm4351_vm5, %v4348_v1 }
 0xcd6 PF: > { %s72_s7 = sadd.s32 1, %s5270_s7  }
 0xcd7   : > { %p69_p1 = scmp.ge.s32.totalorder %s72_s7, 4  }
 0xcd9   :  { %71 = sbr.rel (!%p69_p1) target bundleno = 56 (0x38), region = 221 }
 0xcde   :  { %4372 = vsyncpa [#allocation4], 1 }
 0xcdf   :  { %4374 = vsyncpa [#allocation4 + $0x1], 1 }

</bundles_post_ra>
